<compile_context>
chip_gen: v6e
topology: v6e:2x2x1
jax: 0.10.0
libtpu: 0.0.40
codegen_flags: <defaults>
</compile_context>

<pallas_src>
import math

import jax
import jax.numpy as jnp
from jax import lax
from jax.experimental import pallas as pl
from jax.experimental.pallas import tpu as pltpu


def _layernorm(x, gamma, beta, eps=1e-5):
    # x: (S, E) f32; gamma/beta: (1, E). Biased variance, as in nn.LayerNorm.
    mean = jnp.mean(x, axis=-1, keepdims=True)
    var = jnp.mean((x - mean) ** 2, axis=-1, keepdims=True)
    inv = lax.rsqrt(var + eps)
    return (x - mean) * inv * gamma + beta


def _temporal_attention_layer_kernel(
    # inputs
    x_ref,
    wqkv_ref, bqkv_ref, wo_ref, bo_ref,
    g1_ref, be1_ref,
    w1_ref, b1_ref, w2_ref, b2_ref,
    g2_ref, be2_ref,
    # outputs
    out_ref, attn_ref,
    # scratch
    acc_ref,
):
    h = pl.program_id(1)

    x = x_ref[0]                                   # (S, E) f32
    x_bf = x.astype(jnp.bfloat16)

    @pl.when(h == 0)
    def _():
        acc_ref[...] = jnp.zeros_like(acc_ref)

    # ---- this head's fused Q|K|V projection: (S,E) x (E,3*Dh) on the MXU ----
    # (1/sqrt(Dh) is already folded into the Wq/bq columns.)
    qkv = jnp.dot(x_bf, wqkv_ref[h], preferred_element_type=jnp.float32)
    qkv = qkv + bqkv_ref[h]                        # (S, 3*Dh) f32
    dh = qkv.shape[-1] // 3
    qh = qkv[:, 0:dh].astype(jnp.bfloat16)
    kh = qkv[:, dh:2 * dh].astype(jnp.bfloat16)
    vh = qkv[:, 2 * dh:3 * dh].astype(jnp.bfloat16)

    # energy = qh . kh^T -- contract last dims of both (no explicit transpose)
    energy = lax.dot_general(qh, kh, (((1,), (1,)), ((), ())),
                             preferred_element_type=jnp.float32)   # (S, S) f32

    # softmax in f32 (max-subtracted); denominator via EUP approx reciprocal
    m = jnp.max(energy, axis=-1, keepdims=True)
    p = jnp.exp(energy - m)
    denom = jnp.sum(p, axis=-1, keepdims=True)
    attn = p * pl.reciprocal(denom, approx=True)
    attn_ref[0, 0] = attn.astype(attn_ref.dtype)

    ctx = jnp.dot(attn.astype(jnp.bfloat16), vh,
                  preferred_element_type=jnp.float32)              # (S, Dh) f32

    # fold this head's context straight into the output projection accumulator
    acc_ref[...] += jnp.dot(ctx.astype(jnp.bfloat16), wo_ref[h],
                            preferred_element_type=jnp.float32)    # (S, E) f32

    # ---- epilogue on the last head: residual + LN1 + FFN + LN2 ----
    @pl.when(h == pl.num_programs(1) - 1)
    def _():
        attn_out = acc_ref[...] + bo_ref[...]
        x1 = _layernorm(x + attn_out, g1_ref[...], be1_ref[...])
        h1 = jnp.dot(x1.astype(jnp.bfloat16), w1_ref[...],
                     preferred_element_type=jnp.float32) + b1_ref[...]
        h1 = jnp.maximum(h1, 0.0)
        ff = jnp.dot(h1.astype(jnp.bfloat16), w2_ref[...],
                     preferred_element_type=jnp.float32) + b2_ref[...]
        out_ref[0] = _layernorm(x1 + ff, g2_ref[...], be2_ref[...])


def temporal_attention_layer(x, params, *, num_heads, attn_dtype=jnp.float32):
    """x: (B, S, E) float32.  Returns (out (B,S,E) f32, attention (B,H,S,S) attn_dtype)."""
    B, S, E = x.shape
    H = num_heads
    Dh = E // H
    assert H * Dh == E, "embedding dim must be divisible by num_heads"

    inv_scale = jnp.float32(1.0 / math.sqrt(Dh))

    def head_major_cols(w):     # (E, E) -> (H, E, Dh):  [h] = w[:, h*Dh:(h+1)*Dh]
        return jnp.transpose(w.reshape(E, H, Dh), (1, 0, 2))

    def head_major_bias(b):     # (1, E) -> (H, 1, Dh)
        return jnp.transpose(b.reshape(1, H, Dh), (1, 0, 2))

    # Per-head fused QKV weights/biases (scale folded into Q); bf16 matmul weights.
    wqkv = jnp.concatenate(
        [head_major_cols(params["wq"] * inv_scale),
         head_major_cols(params["wk"]),
         head_major_cols(params["wv"])], axis=2).astype(jnp.bfloat16)     # (H, E, 3Dh)
    bqkv = jnp.concatenate(
        [head_major_bias(params["bq"] * inv_scale),
         head_major_bias(params["bk"]),
         head_major_bias(params["bv"])], axis=2).astype(jnp.float32)      # (H, 1, 3Dh)
    wo = params["wo"].reshape(H, Dh, E).astype(jnp.bfloat16)              # (H, Dh, E)
    w1 = params["w1"].astype(jnp.bfloat16)
    w2 = params["w2"].astype(jnp.bfloat16)

    ordered = [
        wqkv, bqkv, wo, params["bo"].astype(jnp.float32),
        params["g1"], params["be1"],
        w1, params["b1"], w2, params["b2"],
        params["g2"], params["be2"],
    ]

    def _bytes(a):
        return int(a.size) * a.dtype.itemsize

    attn_itemsize = jnp.dtype(attn_dtype).itemsize
    param_bytes = sum(_bytes(p) for p in ordered)

    # Working set: double-buffered x / out / attn blocks + single-buffered weights
    # + the output-projection accumulator scratch.
    working_set = (
        2 * (S * E * 4)
        + 2 * (S * E * 4)
        + 2 * (S * S * attn_itemsize)
        + param_bytes
        + S * E * 4
    )
    try:
        phys_vmem = int(pltpu.get_tpu_info().vmem_capacity_bytes)
    except Exception:
        phys_vmem = 64 * 1024 * 1024      # conservative (v7x per-core VMEM)
    vmem_cap = int(phys_vmem * 0.8)       # leave compiler/scheduler headroom
    vmem_limit = max(32 * 1024 * 1024, min(int(working_set * 3 // 2), vmem_cap))

    flops = int(
        2 * B * S * E * (3 * E)           # fused QKV projections (all heads)
        + 2 * B * H * S * S * Dh * 2      # energy + context matmuls
        + 2 * B * S * E * E               # output projection (accumulated per head)
        + 2 * B * S * E * (4 * E) * 2     # FFN (both linears)
    )
    transcendentals = int(B * H * S * S)
    bytes_accessed = int(
        param_bytes + _bytes(x) + B * S * E * 4 + B * H * S * S * attn_itemsize)
    cost = pl.CostEstimate(flops=flops, transcendentals=transcendentals,
                           bytes_accessed=bytes_accessed)

    def build(buffered_weights):
        def invariant_spec(p):
            idx = lambda b, h, n=p.ndim: (0,) * n
            if buffered_weights:
                # grid-invariant block: single-buffer to halve its VMEM footprint
                return pl.BlockSpec(p.shape, idx, pipeline_mode=pl.Buffered(1))
            return pl.BlockSpec(p.shape, idx)

        in_specs = [pl.BlockSpec((1, S, E), lambda b, h: (b, 0, 0))]
        in_specs += [invariant_spec(p) for p in ordered]

        return pl.pallas_call(
            _temporal_attention_layer_kernel,
            out_shape=(
                jax.ShapeDtypeStruct((B, S, E), jnp.float32),
                jax.ShapeDtypeStruct((B, H, S, S), attn_dtype),
            ),
            grid_spec=pltpu.PrefetchScalarGridSpec(
                num_scalar_prefetch=0,
                grid=(B, H),
                in_specs=in_specs,
                out_specs=(
                    pl.BlockSpec((1, S, E), lambda b, h: (b, 0, 0)),
                    pl.BlockSpec((1, 1, S, S), lambda b, h: (b, h, 0, 0)),
                ),
                scratch_shapes=[pltpu.VMEM((S, E), jnp.float32)],
            ),
            compiler_params=pltpu.CompilerParams(
                dimension_semantics=("parallel", "arbitrary"),
                vmem_limit_bytes=vmem_limit,
            ),
            cost_estimate=cost,
        )

    try:
        return build(True)(x, *ordered)
    except Exception:
        # TODO(synk): pipeline_mode=pl.Buffered(1) unavailable on this jax/Mosaic
        # version; fall back to default double-buffered weight blocks (correct,
        # just more VMEM).
        return build(False)(x, *ordered)


# ---------------- pure-JAX f32 reference (mirrors the PyTorch forward) ----------------
def reference(x, params, *, num_heads):
    B, S, E = x.shape
    Dh = E // num_heads
    q = x @ params["wq"] + params["bq"]
    k = x @ params["wk"] + params["bk"]
    v = x @ params["wv"] + params["bv"]
    q = q.reshape(B, S, num_heads, Dh).transpose(0, 2, 1, 3)
    k = k.reshape(B, S, num_heads, Dh).transpose(0, 2, 1, 3)
    v = v.reshape(B, S, num_heads, Dh).transpose(0, 2, 1, 3)
    energy = jnp.einsum("bhqd,bhkd->bhqk", q, k) / jnp.sqrt(jnp.float32(Dh))
    attn = jax.nn.softmax(energy, axis=-1)
    ctx = jnp.einsum("bhqk,bhkd->bhqd", attn, v)
    ctx = ctx.transpose(0, 2, 1, 3).reshape(B, S, E)
    attn_out = ctx @ params["wo"] + params["bo"]

    def ln(y, g, b):
        m = jnp.mean(y, axis=-1, keepdims=True)
        var = jnp.mean((y - m) ** 2, axis=-1, keepdims=True)
        return (y - m) / jnp.sqrt(var + 1e-5) * g + b

    x1 = ln(x + attn_out, params["g1"], params["be1"])
    ff = jnp.maximum(x1 @ params["w1"] + params["b1"], 0.0) @ params["w2"] + params["b2"]
    x2 = ln(x1 + ff, params["g2"], params["be2"])
    return x2, attn


if __name__ == "__main__":
    B, S, E, H = 2, 8, 32, 4
    key = jax.random.PRNGKey(0)
    keys = jax.random.split(key, 16)

    def lin(kw, kb, fan_in, fan_out):
        # Kaiming-uniform-ish deterministic init; weight stored as [in, out].
        bound = 1.0 / math.sqrt(fan_in)
        w = jax.random.uniform(kw, (fan_in, fan_out), jnp.float32, -bound, bound)
        b = jax.random.uniform(kb, (1, fan_out), jnp.float32, -bound, bound)
        return w, b

    wq, bq = lin(keys[0], keys[1], E, E)
    wk, bk = lin(keys[2], keys[3], E, E)
    wv, bv = lin(keys[4], keys[5], E, E)
    wo, bo = lin(keys[6], keys[7], E, E)
    w1, b1 = lin(keys[8], keys[9], E, 4 * E)
    w2, b2 = lin(keys[10], keys[11], 4 * E, E)
    params = dict(
        wq=wq, bq=bq, wk=wk, bk=bk, wv=wv, bv=bv, wo=wo, bo=bo,
        g1=jnp.ones((1, E), jnp.float32), be1=jnp.zeros((1, E), jnp.float32),
        w1=w1, b1=b1, w2=w2, b2=b2,
        g2=jnp.ones((1, E), jnp.float32), be2=jnp.zeros((1, E), jnp.float32),
    )

    x = jax.random.normal(keys[12], (B, S, E), jnp.float32)

    out, attn = temporal_attention_layer(x, params, num_heads=H)
    out, attn = jax.block_until_ready((out, attn))

    out_ref, attn_ref = reference(x, params, num_heads=H)
    # bf16 matmul operands + approx reciprocal vs. a pure-f32 reference -> loosened tolerances
    assert jnp.allclose(out, out_ref, atol=5e-2, rtol=5e-2), "output mismatch"
    assert jnp.allclose(attn, attn_ref, atol=1e-2, rtol=1e-2), "attention mismatch"
    print("KERNEL_OK")
</pallas_src>

<mosaic_0001>
module attributes {stable_mosaic.version = 11 : i64} {
  func.func @_temporal_attention_layer_kernel(%arg0: i32, %arg1: i32, %arg2: memref<1x8x32xf32, #tpu.memory_space<vmem>>, %arg3: memref<4x32x24xbf16, #tpu.memory_space<vmem>>, %arg4: memref<4x1x24xf32, #tpu.memory_space<vmem>>, %arg5: memref<4x8x32xbf16, #tpu.memory_space<vmem>>, %arg6: memref<1x32xf32, #tpu.memory_space<vmem>>, %arg7: memref<1x32xf32, #tpu.memory_space<vmem>>, %arg8: memref<1x32xf32, #tpu.memory_space<vmem>>, %arg9: memref<32x128xbf16, #tpu.memory_space<vmem>>, %arg10: memref<1x128xf32, #tpu.memory_space<vmem>>, %arg11: memref<128x32xbf16, #tpu.memory_space<vmem>>, %arg12: memref<1x32xf32, #tpu.memory_space<vmem>>, %arg13: memref<1x32xf32, #tpu.memory_space<vmem>>, %arg14: memref<1x32xf32, #tpu.memory_space<vmem>>, %arg15: memref<1x8x32xf32, #tpu.memory_space<vmem>>, %arg16: memref<1x1x8x8xf32, #tpu.memory_space<vmem>>, %arg17: memref<8x32xf32, #tpu.memory_space<vmem>>) attributes {dimension_semantics = [#tpu.dimension_semantics<parallel>, #tpu.dimension_semantics<arbitrary>], iteration_bounds = array<i64: 2, 4>, scalar_prefetch = 0 : i64, scratch_operands = 1 : i64, tpu.core_type = #tpu.core_type<tc>, window_params = [{transform_indices = @transform_0, window_bounds = array<i64: 1, 8, 32>}, {pipeline_mode = #tpu.pipeline_mode<synchronous>, transform_indices = @transform_1, window_bounds = array<i64: 4, 32, 24>}, {pipeline_mode = #tpu.pipeline_mode<synchronous>, transform_indices = @transform_2, window_bounds = array<i64: 4, 1, 24>}, {pipeline_mode = #tpu.pipeline_mode<synchronous>, transform_indices = @transform_3, window_bounds = array<i64: 4, 8, 32>}, {pipeline_mode = #tpu.pipeline_mode<synchronous>, transform_indices = @transform_4, window_bounds = array<i64: 1, 32>}, {pipeline_mode = #tpu.pipeline_mode<synchronous>, transform_indices = @transform_5, window_bounds = array<i64: 1, 32>}, {pipeline_mode = #tpu.pipeline_mode<synchronous>, transform_indices = @transform_6, window_bounds = array<i64: 1, 32>}, {pipeline_mode = #tpu.pipeline_mode<synchronous>, transform_indices = @transform_7, window_bounds = array<i64: 32, 128>}, {pipeline_mode = #tpu.pipeline_mode<synchronous>, transform_indices = @transform_8, window_bounds = array<i64: 1, 128>}, {pipeline_mode = #tpu.pipeline_mode<synchronous>, transform_indices = @transform_9, window_bounds = array<i64: 128, 32>}, {pipeline_mode = #tpu.pipeline_mode<synchronous>, transform_indices = @transform_10, window_bounds = array<i64: 1, 32>}, {pipeline_mode = #tpu.pipeline_mode<synchronous>, transform_indices = @transform_11, window_bounds = array<i64: 1, 32>}, {pipeline_mode = #tpu.pipeline_mode<synchronous>, transform_indices = @transform_12, window_bounds = array<i64: 1, 32>}, {transform_indices = @transform_13, window_bounds = array<i64: 1, 8, 32>}, {transform_indices = @transform_14, window_bounds = array<i64: 1, 1, 8, 8>}]} {
    %c0 = arith.constant 0 : index
    %c0_0 = arith.constant 0 : index
    %c0_1 = arith.constant 0 : index
    %0 = vector.load %arg2[%c0, %c0_0, %c0_1] : memref<1x8x32xf32, #tpu.memory_space<vmem>>, vector<1x8x32xf32>
    %1 = vector.shape_cast %0 : vector<1x8x32xf32> to vector<8x32xf32>
    %2 = arith.truncf %1 : vector<8x32xf32> to vector<8x32xbf16>
    %c0_i32 = arith.constant 0 : i32
    %3 = arith.cmpi eq, %arg1, %c0_i32 : i32
    %4 = arith.extui %3 : i1 to i32
    %c0_i32_2 = arith.constant 0 : i32
    %5 = arith.cmpi ne, %4, %c0_i32_2 : i32
    scf.if %5 {
      %cst_23 = arith.constant 0.000000e+00 : f32
      %48 = vector.broadcast %cst_23 : f32 to vector<8x32xf32>
      %c0_24 = arith.constant 0 : index
      %c0_25 = arith.constant 0 : index
      %49 = vector.load %arg17[%c0_24, %c0_25] : memref<8x32xf32, #tpu.memory_space<vmem>>, vector<8x32xf32>
      tpu.vector_store %arg17[%c0_24, %c0_25], %48 {strides = array<i32>} : memref<8x32xf32, #tpu.memory_space<vmem>>, vector<8x32xf32>,
    } else {
    }
    %6 = arith.index_cast %arg1 : i32 to index
    %c0_3 = arith.constant 0 : index
    %c0_4 = arith.constant 0 : index
    %7 = vector.load %arg3[%6, %c0_3, %c0_4] : memref<4x32x24xbf16, #tpu.memory_space<vmem>>, vector<1x32x24xbf16>
    %8 = vector.shape_cast %7 : vector<1x32x24xbf16> to vector<32x24xbf16>
    %cst = arith.constant dense<0.000000e+00> : vector<8x24xf32>
    %9 = tpu.matmul %2, %8, %cst {dimension_numbers = #tpu.dot_dimension_numbers<[1], [0], [0], [1], [0, 0, 1, 1], [], []>} : vector<8x32xbf16>, vector<32x24xbf16>, vector<8x24xf32> -> vector<8x24xf32>
    %10 = arith.index_cast %arg1 : i32 to index
    %c0_5 = arith.constant 0 : index
    %c0_6 = arith.constant 0 : index
    %11 = vector.load %arg4[%10, %c0_5, %c0_6] : memref<4x1x24xf32, #tpu.memory_space<vmem>>, vector<1x1x24xf32>
    %12 = vector.shape_cast %11 : vector<1x1x24xf32> to vector<1x24xf32>
    %13 = vector.broadcast %12 : vector<1x24xf32> to vector<8x24xf32>
    %14 = arith.addf %9, %13 : vector<8x24xf32>
    %15 = vector.extract_strided_slice %14 {offsets = [0, 0], sizes = [8, 8], strides = [1, 1]} : vector<8x24xf32> to vector<8x8xf32>
    %16 = arith.truncf %15 : vector<8x8xf32> to vector<8x8xbf16>
    %17 = vector.extract_strided_slice %14 {offsets = [0, 8], sizes = [8, 8], strides = [1, 1]} : vector<8x24xf32> to vector<8x8xf32>
    %18 = arith.truncf %17 : vector<8x8xf32> to vector<8x8xbf16>
    %19 = vector.extract_strided_slice %14 {offsets = [0, 16], sizes = [8, 8], strides = [1, 1]} : vector<8x24xf32> to vector<8x8xf32>
    %20 = arith.truncf %19 : vector<8x8xf32> to vector<8x8xbf16>
    %cst_7 = arith.constant dense<0.000000e+00> : vector<8x8xf32>
    %21 = tpu.matmul %16, %18, %cst_7 {dimension_numbers = #tpu.dot_dimension_numbers<[1], [1], [0], [0], [0, 0, 1, 0], [], []>} : vector<8x8xbf16>, vector<8x8xbf16>, vector<8x8xf32> -> vector<8x8xf32>
    %cst_8 = arith.constant dense<0xFF800000> : vector<8xf32>
    %22 = vector.multi_reduction <maximumf>, %21, %cst_8 [1] : vector<8x8xf32> to vector<8xf32>
    %23 = vector.shape_cast %22 : vector<8xf32> to vector<8x1xf32>
    %24 = vector.broadcast %23 : vector<8x1xf32> to vector<8x8xf32>
    %25 = arith.subf %21, %24 : vector<8x8xf32>
    %26 = math.exp %25 : vector<8x8xf32>
    %cst_9 = arith.constant dense<0.000000e+00> : vector<8xf32>
    %27 = vector.multi_reduction <add>, %26, %cst_9 [1] : vector<8x8xf32> to vector<8xf32>
    %28 = vector.shape_cast %27 : vector<8xf32> to vector<8x1xf32>
    %29 = tpu.reciprocal %28 {approx = true} : vector<8x1xf32> -> vector<8x1xf32>
    %30 = vector.broadcast %29 : vector<8x1xf32> to vector<8x8xf32>
    %31 = arith.mulf %26, %30 : vector<8x8xf32>
    %c0_10 = arith.constant 0 : index
    %c0_11 = arith.constant 0 : index
    %c0_12 = arith.constant 0 : index
    %c0_13 = arith.constant 0 : index
    %32 = vector.load %arg16[%c0_10, %c0_11, %c0_12, %c0_13] : memref<1x1x8x8xf32, #tpu.memory_space<vmem>>, vector<1x1x8x8xf32>
    %33 = vector.shape_cast %32 : vector<1x1x8x8xf32> to vector<8x8xf32>
    %34 = vector.shape_cast %31 : vector<8x8xf32> to vector<1x1x8x8xf32>
    tpu.vector_store %arg16[%c0_10, %c0_11, %c0_12, %c0_13], %34 {strides = array<i32>} : memref<1x1x8x8xf32, #tpu.memory_space<vmem>>, vector<1x1x8x8xf32>,
    %35 = arith.truncf %31 : vector<8x8xf32> to vector<8x8xbf16>
    %cst_14 = arith.constant dense<0.000000e+00> : vector<8x8xf32>
    %36 = tpu.matmul %35, %20, %cst_14 {dimension_numbers = #tpu.dot_dimension_numbers<[1], [0], [0], [1], [0, 0, 1, 1], [], []>} : vector<8x8xbf16>, vector<8x8xbf16>, vector<8x8xf32> -> vector<8x8xf32>
    %c0_15 = arith.constant 0 : index
    %c0_16 = arith.constant 0 : index
    %37 = vector.load %arg17[%c0_15, %c0_16] : memref<8x32xf32, #tpu.memory_space<vmem>>, vector<8x32xf32>
    %38 = arith.truncf %36 : vector<8x8xf32> to vector<8x8xbf16>
    %39 = arith.index_cast %arg1 : i32 to index
    %c0_17 = arith.constant 0 : index
    %c0_18 = arith.constant 0 : index
    %40 = vector.load %arg5[%39, %c0_17, %c0_18] : memref<4x8x32xbf16, #tpu.memory_space<vmem>>, vector<1x8x32xbf16>
    %41 = vector.shape_cast %40 : vector<1x8x32xbf16> to vector<8x32xbf16>
    %cst_19 = arith.constant dense<0.000000e+00> : vector<8x32xf32>
    %42 = tpu.matmul %38, %41, %cst_19 {dimension_numbers = #tpu.dot_dimension_numbers<[1], [0], [0], [1], [0, 0, 1, 1], [], []>} : vector<8x8xbf16>, vector<8x32xbf16>, vector<8x32xf32> -> vector<8x32xf32>
    %43 = arith.addf %37, %42 : vector<8x32xf32>
    %c0_20 = arith.constant 0 : index
    %c0_21 = arith.constant 0 : index
    %44 = vector.load %arg17[%c0_20, %c0_21] : memref<8x32xf32, #tpu.memory_space<vmem>>, vector<8x32xf32>
    tpu.vector_store %arg17[%c0_20, %c0_21], %43 {strides = array<i32>} : memref<8x32xf32, #tpu.memory_space<vmem>>, vector<8x32xf32>,
    %c3_i32 = arith.constant 3 : i32
    %45 = arith.cmpi eq, %arg1, %c3_i32 : i32
    %46 = arith.extui %45 : i1 to i32
    %c0_i32_22 = arith.constant 0 : i32
    %47 = arith.cmpi ne, %46, %c0_i32_22 : i32
    scf.if %47 {
      %c0_23 = arith.constant 0 : index
      %c0_24 = arith.constant 0 : index
      %48 = vector.load %arg17[%c0_23, %c0_24] : memref<8x32xf32, #tpu.memory_space<vmem>>, vector<8x32xf32>
      %c0_25 = arith.constant 0 : index
      %c0_26 = arith.constant 0 : index
      %49 = vector.load %arg6[%c0_25, %c0_26] : memref<1x32xf32, #tpu.memory_space<vmem>>, vector<1x32xf32>
      %50 = vector.broadcast %49 : vector<1x32xf32> to vector<8x32xf32>
      %51 = arith.addf %48, %50 : vector<8x32xf32>
      %52 = arith.addf %1, %51 : vector<8x32xf32>
      %c0_27 = arith.constant 0 : index
      %c0_28 = arith.constant 0 : index
      %53 = vector.load %arg7[%c0_27, %c0_28] : memref<1x32xf32, #tpu.memory_space<vmem>>, vector<1x32xf32>
      %c0_29 = arith.constant 0 : index
      %c0_30 = arith.constant 0 : index
      %54 = vector.load %arg8[%c0_29, %c0_30] : memref<1x32xf32, #tpu.memory_space<vmem>>, vector<1x32xf32>
      %cst_31 = arith.constant dense<0.000000e+00> : vector<8xf32>
      %55 = vector.multi_reduction <add>, %52, %cst_31 [1] : vector<8x32xf32> to vector<8xf32>
      %56 = vector.shape_cast %55 : vector<8xf32> to vector<8x1xf32>
      %cst_32 = arith.constant 3.200000e+01 : f32
      %57 = vector.broadcast %cst_32 : f32 to vector<8x1xf32>
      %58 = arith.divf %56, %57 : vector<8x1xf32>
      %59 = vector.broadcast %58 : vector<8x1xf32> to vector<8x32xf32>
      %60 = arith.subf %52, %59 : vector<8x32xf32>
      %61 = arith.mulf %60, %60 : vector<8x32xf32>
      %cst_33 = arith.constant dense<0.000000e+00> : vector<8xf32>
      %62 = vector.multi_reduction <add>, %61, %cst_33 [1] : vector<8x32xf32> to vector<8xf32>
      %63 = vector.shape_cast %62 : vector<8xf32> to vector<8x1xf32>
      %cst_34 = arith.constant 3.200000e+01 : f32
      %64 = vector.broadcast %cst_34 : f32 to vector<8x1xf32>
      %65 = arith.divf %63, %64 : vector<8x1xf32>
      %cst_35 = arith.constant 9.99999974E-6 : f32
      %66 = vector.broadcast %cst_35 : f32 to vector<8x1xf32>
      %67 = arith.addf %65, %66 : vector<8x1xf32>
      %68 = math.rsqrt %67 : vector<8x1xf32>
      %69 = vector.broadcast %58 : vector<8x1xf32> to vector<8x32xf32>
      %70 = arith.subf %52, %69 : vector<8x32xf32>
      %71 = vector.broadcast %68 : vector<8x1xf32> to vector<8x32xf32>
      %72 = arith.mulf %70, %71 : vector<8x32xf32>
      %73 = vector.broadcast %53 : vector<1x32xf32> to vector<8x32xf32>
      %74 = arith.mulf %72, %73 : vector<8x32xf32>
      %75 = vector.broadcast %54 : vector<1x32xf32> to vector<8x32xf32>
      %76 = arith.addf %74, %75 : vector<8x32xf32>
      %77 = arith.truncf %76 : vector<8x32xf32> to vector<8x32xbf16>
      %c0_36 = arith.constant 0 : index
      %c0_37 = arith.constant 0 : index
      %78 = vector.load %arg9[%c0_36, %c0_37] : memref<32x128xbf16, #tpu.memory_space<vmem>>, vector<32x128xbf16>
      %cst_38 = arith.constant dense<0.000000e+00> : vector<8x128xf32>
      %79 = tpu.matmul %77, %78, %cst_38 {dimension_numbers = #tpu.dot_dimension_numbers<[1], [0], [0], [1], [0, 0, 1, 1], [], []>} : vector<8x32xbf16>, vector<32x128xbf16>, vector<8x128xf32> -> vector<8x128xf32>
      %c0_39 = arith.constant 0 : index
      %c0_40 = arith.constant 0 : index
      %80 = vector.load %arg10[%c0_39, %c0_40] : memref<1x128xf32, #tpu.memory_space<vmem>>, vector<1x128xf32>
      %81 = vector.broadcast %80 : vector<1x128xf32> to vector<8x128xf32>
      %82 = arith.addf %79, %81 : vector<8x128xf32>
      %cst_41 = arith.constant 0.000000e+00 : f32
      %83 = vector.broadcast %cst_41 : f32 to vector<8x128xf32>
      %84 = arith.maximumf %82, %83 : vector<8x128xf32>
      %85 = arith.truncf %84 : vector<8x128xf32> to vector<8x128xbf16>
      %c0_42 = arith.constant 0 : index
      %c0_43 = arith.constant 0 : index
      %86 = vector.load %arg11[%c0_42, %c0_43] : memref<128x32xbf16, #tpu.memory_space<vmem>>, vector<128x32xbf16>
      %cst_44 = arith.constant dense<0.000000e+00> : vector<8x32xf32>
      %87 = tpu.matmul %85, %86, %cst_44 {dimension_numbers = #tpu.dot_dimension_numbers<[1], [0], [0], [1], [0, 0, 1, 1], [], []>} : vector<8x128xbf16>, vector<128x32xbf16>, vector<8x32xf32> -> vector<8x32xf32>
      %c0_45 = arith.constant 0 : index
      %c0_46 = arith.constant 0 : index
      %88 = vector.load %arg12[%c0_45, %c0_46] : memref<1x32xf32, #tpu.memory_space<vmem>>, vector<1x32xf32>
      %89 = vector.broadcast %88 : vector<1x32xf32> to vector<8x32xf32>
      %90 = arith.addf %87, %89 : vector<8x32xf32>
      %91 = arith.addf %76, %90 : vector<8x32xf32>
      %c0_47 = arith.constant 0 : index
      %c0_48 = arith.constant 0 : index
      %92 = vector.load %arg13[%c0_47, %c0_48] : memref<1x32xf32, #tpu.memory_space<vmem>>, vector<1x32xf32>
      %c0_49 = arith.constant 0 : index
      %c0_50 = arith.constant 0 : index
      %93 = vector.load %arg14[%c0_49, %c0_50] : memref<1x32xf32, #tpu.memory_space<vmem>>, vector<1x32xf32>
      %cst_51 = arith.constant dense<0.000000e+00> : vector<8xf32>
      %94 = vector.multi_reduction <add>, %91, %cst_51 [1] : vector<8x32xf32> to vector<8xf32>
      %95 = vector.shape_cast %94 : vector<8xf32> to vector<8x1xf32>
      %cst_52 = arith.constant 3.200000e+01 : f32
      %96 = vector.broadcast %cst_52 : f32 to vector<8x1xf32>
      %97 = arith.divf %95, %96 : vector<8x1xf32>
      %98 = vector.broadcast %97 : vector<8x1xf32> to vector<8x32xf32>
      %99 = arith.subf %91, %98 : vector<8x32xf32>
      %100 = arith.mulf %99, %99 : vector<8x32xf32>
      %cst_53 = arith.constant dense<0.000000e+00> : vector<8xf32>
      %101 = vector.multi_reduction <add>, %100, %cst_53 [1] : vector<8x32xf32> to vector<8xf32>
      %102 = vector.shape_cast %101 : vector<8xf32> to vector<8x1xf32>
      %cst_54 = arith.constant 3.200000e+01 : f32
      %103 = vector.broadcast %cst_54 : f32 to vector<8x1xf32>
      %104 = arith.divf %102, %103 : vector<8x1xf32>
      %cst_55 = arith.constant 9.99999974E-6 : f32
      %105 = vector.broadcast %cst_55 : f32 to vector<8x1xf32>
      %106 = arith.addf %104, %105 : vector<8x1xf32>
      %107 = math.rsqrt %106 : vector<8x1xf32>
      %108 = vector.broadcast %97 : vector<8x1xf32> to vector<8x32xf32>
      %109 = arith.subf %91, %108 : vector<8x32xf32>
      %110 = vector.broadcast %107 : vector<8x1xf32> to vector<8x32xf32>
      %111 = arith.mulf %109, %110 : vector<8x32xf32>
      %112 = vector.broadcast %92 : vector<1x32xf32> to vector<8x32xf32>
      %113 = arith.mulf %111, %112 : vector<8x32xf32>
      %114 = vector.broadcast %93 : vector<1x32xf32> to vector<8x32xf32>
      %115 = arith.addf %113, %114 : vector<8x32xf32>
      %c0_56 = arith.constant 0 : index
      %c0_57 = arith.constant 0 : index
      %c0_58 = arith.constant 0 : index
      %116 = vector.load %arg15[%c0_56, %c0_57, %c0_58] : memref<1x8x32xf32, #tpu.memory_space<vmem>>, vector<1x8x32xf32>
      %117 = vector.shape_cast %116 : vector<1x8x32xf32> to vector<8x32xf32>
      %118 = vector.shape_cast %115 : vector<8x32xf32> to vector<1x8x32xf32>
      tpu.vector_store %arg15[%c0_56, %c0_57, %c0_58], %118 {strides = array<i32>} : memref<1x8x32xf32, #tpu.memory_space<vmem>>, vector<1x8x32xf32>,
    } else {
    }
    return
  }
  func.func @transform_0(%arg0: i32, %arg1: i32) -> (i32, i32, i32) {
    %c0_i32 = arith.constant 0 : i32
    %c0_i32_0 = arith.constant 0 : i32
    %c0_i32_1 = arith.constant 0 : i32
    return %arg0, %c0_i32, %c0_i32_0 : i32, i32, i32
  }
  func.func @transform_1(%arg0: i32, %arg1: i32) -> (i32, i32, i32) {
    %c0_i32 = arith.constant 0 : i32
    %c0_i32_0 = arith.constant 0 : i32
    %c0_i32_1 = arith.constant 0 : i32
    %c0_i32_2 = arith.constant 0 : i32
    return %c0_i32, %c0_i32_0, %c0_i32_1 : i32, i32, i32
  }
  func.func @transform_2(%arg0: i32, %arg1: i32) -> (i32, i32, i32) {
    %c0_i32 = arith.constant 0 : i32
    %c0_i32_0 = arith.constant 0 : i32
    %c0_i32_1 = arith.constant 0 : i32
    %c0_i32_2 = arith.constant 0 : i32
    return %c0_i32, %c0_i32_0, %c0_i32_1 : i32, i32, i32
  }
  func.func @transform_3(%arg0: i32, %arg1: i32) -> (i32, i32, i32) {
    %c0_i32 = arith.constant 0 : i32
    %c0_i32_0 = arith.constant 0 : i32
    %c0_i32_1 = arith.constant 0 : i32
    %c0_i32_2 = arith.constant 0 : i32
    return %c0_i32, %c0_i32_0, %c0_i32_1 : i32, i32, i32
  }
  func.func @transform_4(%arg0: i32, %arg1: i32) -> (i32, i32) {
    %c0_i32 = arith.constant 0 : i32
    %c0_i32_0 = arith.constant 0 : i32
    %c0_i32_1 = arith.constant 0 : i32
    return %c0_i32, %c0_i32_0 : i32, i32
  }
  func.func @transform_5(%arg0: i32, %arg1: i32) -> (i32, i32) {
    %c0_i32 = arith.constant 0 : i32
    %c0_i32_0 = arith.constant 0 : i32
    %c0_i32_1 = arith.constant 0 : i32
    return %c0_i32, %c0_i32_0 : i32, i32
  }
  func.func @transform_6(%arg0: i32, %arg1: i32) -> (i32, i32) {
    %c0_i32 = arith.constant 0 : i32
    %c0_i32_0 = arith.constant 0 : i32
    %c0_i32_1 = arith.constant 0 : i32
    return %c0_i32, %c0_i32_0 : i32, i32
  }
  func.func @transform_7(%arg0: i32, %arg1: i32) -> (i32, i32) {
    %c0_i32 = arith.constant 0 : i32
    %c0_i32_0 = arith.constant 0 : i32
    %c0_i32_1 = arith.constant 0 : i32
    return %c0_i32, %c0_i32_0 : i32, i32
  }
  func.func @transform_8(%arg0: i32, %arg1: i32) -> (i32, i32) {
    %c0_i32 = arith.constant 0 : i32
    %c0_i32_0 = arith.constant 0 : i32
    %c0_i32_1 = arith.constant 0 : i32
    return %c0_i32, %c0_i32_0 : i32, i32
  }
  func.func @transform_9(%arg0: i32, %arg1: i32) -> (i32, i32) {
    %c0_i32 = arith.constant 0 : i32
    %c0_i32_0 = arith.constant 0 : i32
    %c0_i32_1 = arith.constant 0 : i32
    return %c0_i32, %c0_i32_0 : i32, i32
  }
  func.func @transform_10(%arg0: i32, %arg1: i32) -> (i32, i32) {
    %c0_i32 = arith.constant 0 : i32
    %c0_i32_0 = arith.constant 0 : i32
    %c0_i32_1 = arith.constant 0 : i32
    return %c0_i32, %c0_i32_0 : i32, i32
  }
  func.func @transform_11(%arg0: i32, %arg1: i32) -> (i32, i32) {
    %c0_i32 = arith.constant 0 : i32
    %c0_i32_0 = arith.constant 0 : i32
    %c0_i32_1 = arith.constant 0 : i32
    return %c0_i32, %c0_i32_0 : i32, i32
  }
  func.func @transform_12(%arg0: i32, %arg1: i32) -> (i32, i32) {
    %c0_i32 = arith.constant 0 : i32
    %c0_i32_0 = arith.constant 0 : i32
    %c0_i32_1 = arith.constant 0 : i32
    return %c0_i32, %c0_i32_0 : i32, i32
  }
  func.func @transform_13(%arg0: i32, %arg1: i32) -> (i32, i32, i32) {
    %c0_i32 = arith.constant 0 : i32
    %c0_i32_0 = arith.constant 0 : i32
    %c0_i32_1 = arith.constant 0 : i32
    return %arg0, %c0_i32, %c0_i32_0 : i32, i32, i32
  }
  func.func @transform_14(%arg0: i32, %arg1: i32) -> (i32, i32, i32, i32) {
    %c0_i32 = arith.constant 0 : i32
    %c0_i32_0 = arith.constant 0 : i32
    %c0_i32_1 = arith.constant 0 : i32
    return %arg0, %arg1, %c0_i32, %c0_i32_0 : i32, i32, i32, i32
  }
}

module attributes {stable_mosaic.version = 11 : i64} {
  func.func @_temporal_attention_layer_kernel(%arg0: i32, %arg1: i32, %arg2: memref<1x8x32xf32, #tpu.memory_space<vmem>>, %arg3: memref<4x32x24xbf16, #tpu.memory_space<vmem>>, %arg4: memref<4x1x24xf32, #tpu.memory_space<vmem>>, %arg5: memref<4x8x32xbf16, #tpu.memory_space<vmem>>, %arg6: memref<1x32xf32, #tpu.memory_space<vmem>>, %arg7: memref<1x32xf32, #tpu.memory_space<vmem>>, %arg8: memref<1x32xf32, #tpu.memory_space<vmem>>, %arg9: memref<32x128xbf16, #tpu.memory_space<vmem>>, %arg10: memref<1x128xf32, #tpu.memory_space<vmem>>, %arg11: memref<128x32xbf16, #tpu.memory_space<vmem>>, %arg12: memref<1x32xf32, #tpu.memory_space<vmem>>, %arg13: memref<1x32xf32, #tpu.memory_space<vmem>>, %arg14: memref<1x32xf32, #tpu.memory_space<vmem>>, %arg15: memref<1x8x32xf32, #tpu.memory_space<vmem>>, %arg16: memref<1x1x8x8xf32, #tpu.memory_space<vmem>>, %arg17: memref<8x32xf32, #tpu.memory_space<vmem>>) attributes {dimension_semantics = [#tpu.dimension_semantics<parallel>, #tpu.dimension_semantics<arbitrary>], iteration_bounds = array<i64: 2, 4>, scalar_prefetch = 0 : i64, scratch_operands = 1 : i64, tpu.core_type = #tpu.core_type<tc>, window_params = [{transform_indices = @transform_0, window_bounds = array<i64: 1, 8, 32>}, {pipeline_mode = #tpu.pipeline_mode<synchronous>, transform_indices = @transform_1, window_bounds = array<i64: 4, 32, 24>}, {pipeline_mode = #tpu.pipeline_mode<synchronous>, transform_indices = @transform_2, window_bounds = array<i64: 4, 1, 24>}, {pipeline_mode = #tpu.pipeline_mode<synchronous>, transform_indices = @transform_3, window_bounds = array<i64: 4, 8, 32>}, {pipeline_mode = #tpu.pipeline_mode<synchronous>, transform_indices = @transform_4, window_bounds = array<i64: 1, 32>}, {pipeline_mode = #tpu.pipeline_mode<synchronous>, transform_indices = @transform_5, window_bounds = array<i64: 1, 32>}, {pipeline_mode = #tpu.pipeline_mode<synchronous>, transform_indices = @transform_6, window_bounds = array<i64: 1, 32>}, {pipeline_mode = #tpu.pipeline_mode<synchronous>, transform_indices = @transform_7, window_bounds = array<i64: 32, 128>}, {pipeline_mode = #tpu.pipeline_mode<synchronous>, transform_indices = @transform_8, window_bounds = array<i64: 1, 128>}, {pipeline_mode = #tpu.pipeline_mode<synchronous>, transform_indices = @transform_9, window_bounds = array<i64: 128, 32>}, {pipeline_mode = #tpu.pipeline_mode<synchronous>, transform_indices = @transform_10, window_bounds = array<i64: 1, 32>}, {pipeline_mode = #tpu.pipeline_mode<synchronous>, transform_indices = @transform_11, window_bounds = array<i64: 1, 32>}, {pipeline_mode = #tpu.pipeline_mode<synchronous>, transform_indices = @transform_12, window_bounds = array<i64: 1, 32>}, {transform_indices = @transform_13, window_bounds = array<i64: 1, 8, 32>}, {transform_indices = @transform_14, window_bounds = array<i64: 1, 1, 8, 8>}]} {
    %c0 = arith.constant 0 : index
    %c0_0 = arith.constant 0 : index
    %c0_1 = arith.constant 0 : index
    %0 = vector.load %arg2[%c0, %c0_0, %c0_1] : memref<1x8x32xf32, #tpu.memory_space<vmem>>, vector<1x8x32xf32>
    %1 = vector.shape_cast %0 : vector<1x8x32xf32> to vector<8x32xf32>
    %2 = arith.truncf %1 : vector<8x32xf32> to vector<8x32xbf16>
    %c0_i32 = arith.constant 0 : i32
    %3 = arith.cmpi eq, %arg1, %c0_i32 : i32
    %4 = arith.extui %3 : i1 to i32
    %c0_i32_2 = arith.constant 0 : i32
    %5 = arith.cmpi ne, %4, %c0_i32_2 : i32
    scf.if %5 {
      %cst_23 = arith.constant 0.000000e+00 : f32
      %48 = vector.broadcast %cst_23 : f32 to vector<8x32xf32>
      %c0_24 = arith.constant 0 : index
      %c0_25 = arith.constant 0 : index
      %49 = vector.load %arg17[%c0_24, %c0_25] : memref<8x32xf32, #tpu.memory_space<vmem>>, vector<8x32xf32>
      tpu.vector_store %arg17[%c0_24, %c0_25], %48 {strides = array<i32>} : memref<8x32xf32, #tpu.memory_space<vmem>>, vector<8x32xf32>,
    } else {
    }
    %6 = arith.index_cast %arg1 : i32 to index
    %c0_3 = arith.constant 0 : index
    %c0_4 = arith.constant 0 : index
    %7 = vector.load %arg3[%6, %c0_3, %c0_4] : memref<4x32x24xbf16, #tpu.memory_space<vmem>>, vector<1x32x24xbf16>
    %8 = vector.shape_cast %7 : vector<1x32x24xbf16> to vector<32x24xbf16>
    %cst = arith.constant dense<0.000000e+00> : vector<8x24xf32>
    %9 = tpu.matmul %2, %8, %cst {dimension_numbers = #tpu.dot_dimension_numbers<[1], [0], [0], [1], [0, 0, 1, 1], [], []>} : vector<8x32xbf16>, vector<32x24xbf16>, vector<8x24xf32> -> vector<8x24xf32>
    %10 = arith.index_cast %arg1 : i32 to index
    %c0_5 = arith.constant 0 : index
    %c0_6 = arith.constant 0 : index
    %11 = vector.load %arg4[%10, %c0_5, %c0_6] : memref<4x1x24xf32, #tpu.memory_space<vmem>>, vector<1x1x24xf32>
    %12 = vector.shape_cast %11 : vector<1x1x24xf32> to vector<1x24xf32>
    %13 = vector.broadcast %12 : vector<1x24xf32> to vector<8x24xf32>
    %14 = arith.addf %9, %13 : vector<8x24xf32>
    %15 = vector.extract_strided_slice %14 {offsets = [0, 0], sizes = [8, 8], strides = [1, 1]} : vector<8x24xf32> to vector<8x8xf32>
    %16 = arith.truncf %15 : vector<8x8xf32> to vector<8x8xbf16>
    %17 = vector.extract_strided_slice %14 {offsets = [0, 8], sizes = [8, 8], strides = [1, 1]} : vector<8x24xf32> to vector<8x8xf32>
    %18 = arith.truncf %17 : vector<8x8xf32> to vector<8x8xbf16>
    %19 = vector.extract_strided_slice %14 {offsets = [0, 16], sizes = [8, 8], strides = [1, 1]} : vector<8x24xf32> to vector<8x8xf32>
    %20 = arith.truncf %19 : vector<8x8xf32> to vector<8x8xbf16>
    %cst_7 = arith.constant dense<0.000000e+00> : vector<8x8xf32>
    %21 = tpu.matmul %16, %18, %cst_7 {dimension_numbers = #tpu.dot_dimension_numbers<[1], [1], [0], [0], [0, 0, 1, 0], [], []>} : vector<8x8xbf16>, vector<8x8xbf16>, vector<8x8xf32> -> vector<8x8xf32>
    %cst_8 = arith.constant dense<0xFF800000> : vector<8xf32>
    %22 = vector.multi_reduction <maximumf>, %21, %cst_8 [1] : vector<8x8xf32> to vector<8xf32>
    %23 = vector.shape_cast %22 : vector<8xf32> to vector<8x1xf32>
    %24 = vector.broadcast %23 : vector<8x1xf32> to vector<8x8xf32>
    %25 = arith.subf %21, %24 : vector<8x8xf32>
    %26 = math.exp %25 : vector<8x8xf32>
    %cst_9 = arith.constant dense<0.000000e+00> : vector<8xf32>
    %27 = vector.multi_reduction <add>, %26, %cst_9 [1] : vector<8x8xf32> to vector<8xf32>
    %28 = vector.shape_cast %27 : vector<8xf32> to vector<8x1xf32>
    %29 = tpu.reciprocal %28 {approx = true} : vector<8x1xf32> -> vector<8x1xf32>
    %30 = vector.broadcast %29 : vector<8x1xf32> to vector<8x8xf32>
    %31 = arith.mulf %26, %30 : vector<8x8xf32>
    %c0_10 = arith.constant 0 : index
    %c0_11 = arith.constant 0 : index
    %c0_12 = arith.constant 0 : index
    %c0_13 = arith.constant 0 : index
    %32 = vector.load %arg16[%c0_10, %c0_11, %c0_12, %c0_13] : memref<1x1x8x8xf32, #tpu.memory_space<vmem>>, vector<1x1x8x8xf32>
    %33 = vector.shape_cast %32 : vector<1x1x8x8xf32> to vector<8x8xf32>
    %34 = vector.shape_cast %31 : vector<8x8xf32> to vector<1x1x8x8xf32>
    tpu.vector_store %arg16[%c0_10, %c0_11, %c0_12, %c0_13], %34 {strides = array<i32>} : memref<1x1x8x8xf32, #tpu.memory_space<vmem>>, vector<1x1x8x8xf32>,
    %35 = arith.truncf %31 : vector<8x8xf32> to vector<8x8xbf16>
    %cst_14 = arith.constant dense<0.000000e+00> : vector<8x8xf32>
    %36 = tpu.matmul %35, %20, %cst_14 {dimension_numbers = #tpu.dot_dimension_numbers<[1], [0], [0], [1], [0, 0, 1, 1], [], []>} : vector<8x8xbf16>, vector<8x8xbf16>, vector<8x8xf32> -> vector<8x8xf32>
    %c0_15 = arith.constant 0 : index
    %c0_16 = arith.constant 0 : index
    %37 = vector.load %arg17[%c0_15, %c0_16] : memref<8x32xf32, #tpu.memory_space<vmem>>, vector<8x32xf32>
    %38 = arith.truncf %36 : vector<8x8xf32> to vector<8x8xbf16>
    %39 = arith.index_cast %arg1 : i32 to index
    %c0_17 = arith.constant 0 : index
    %c0_18 = arith.constant 0 : index
    %40 = vector.load %arg5[%39, %c0_17, %c0_18] : memref<4x8x32xbf16, #tpu.memory_space<vmem>>, vector<1x8x32xbf16>
    %41 = vector.shape_cast %40 : vector<1x8x32xbf16> to vector<8x32xbf16>
    %cst_19 = arith.constant dense<0.000000e+00> : vector<8x32xf32>
    %42 = tpu.matmul %38, %41, %cst_19 {dimension_numbers = #tpu.dot_dimension_numbers<[1], [0], [0], [1], [0, 0, 1, 1], [], []>} : vector<8x8xbf16>, vector<8x32xbf16>, vector<8x32xf32> -> vector<8x32xf32>
    %43 = arith.addf %37, %42 : vector<8x32xf32>
    %c0_20 = arith.constant 0 : index
    %c0_21 = arith.constant 0 : index
    %44 = vector.load %arg17[%c0_20, %c0_21] : memref<8x32xf32, #tpu.memory_space<vmem>>, vector<8x32xf32>
    tpu.vector_store %arg17[%c0_20, %c0_21], %43 {strides = array<i32>} : memref<8x32xf32, #tpu.memory_space<vmem>>, vector<8x32xf32>,
    %c3_i32 = arith.constant 3 : i32
    %45 = arith.cmpi eq, %arg1, %c3_i32 : i32
    %46 = arith.extui %45 : i1 to i32
    %c0_i32_22 = arith.constant 0 : i32
    %47 = arith.cmpi ne, %46, %c0_i32_22 : i32
    scf.if %47 {
      %c0_23 = arith.constant 0 : index
      %c0_24 = arith.constant 0 : index
      %48 = vector.load %arg17[%c0_23, %c0_24] : memref<8x32xf32, #tpu.memory_space<vmem>>, vector<8x32xf32>
      %c0_25 = arith.constant 0 : index
      %c0_26 = arith.constant 0 : index
      %49 = vector.load %arg6[%c0_25, %c0_26] : memref<1x32xf32, #tpu.memory_space<vmem>>, vector<1x32xf32>
      %50 = vector.broadcast %49 : vector<1x32xf32> to vector<8x32xf32>
      %51 = arith.addf %48, %50 : vector<8x32xf32>
      %52 = arith.addf %1, %51 : vector<8x32xf32>
      %c0_27 = arith.constant 0 : index
      %c0_28 = arith.constant 0 : index
      %53 = vector.load %arg7[%c0_27, %c0_28] : memref<1x32xf32, #tpu.memory_space<vmem>>, vector<1x32xf32>
      %c0_29 = arith.constant 0 : index
      %c0_30 = arith.constant 0 : index
      %54 = vector.load %arg8[%c0_29, %c0_30] : memref<1x32xf32, #tpu.memory_space<vmem>>, vector<1x32xf32>
      %cst_31 = arith.constant dense<0.000000e+00> : vector<8xf32>
      %55 = vector.multi_reduction <add>, %52, %cst_31 [1] : vector<8x32xf32> to vector<8xf32>
      %56 = vector.shape_cast %55 : vector<8xf32> to vector<8x1xf32>
      %cst_32 = arith.constant 3.200000e+01 : f32
      %57 = vector.broadcast %cst_32 : f32 to vector<8x1xf32>
      %58 = arith.divf %56, %57 : vector<8x1xf32>
      %59 = vector.broadcast %58 : vector<8x1xf32> to vector<8x32xf32>
      %60 = arith.subf %52, %59 : vector<8x32xf32>
      %61 = arith.mulf %60, %60 : vector<8x32xf32>
      %cst_33 = arith.constant dense<0.000000e+00> : vector<8xf32>
      %62 = vector.multi_reduction <add>, %61, %cst_33 [1] : vector<8x32xf32> to vector<8xf32>
      %63 = vector.shape_cast %62 : vector<8xf32> to vector<8x1xf32>
      %cst_34 = arith.constant 3.200000e+01 : f32
      %64 = vector.broadcast %cst_34 : f32 to vector<8x1xf32>
      %65 = arith.divf %63, %64 : vector<8x1xf32>
      %cst_35 = arith.constant 9.99999974E-6 : f32
      %66 = vector.broadcast %cst_35 : f32 to vector<8x1xf32>
      %67 = arith.addf %65, %66 : vector<8x1xf32>
      %68 = math.rsqrt %67 : vector<8x1xf32>
      %69 = vector.broadcast %58 : vector<8x1xf32> to vector<8x32xf32>
      %70 = arith.subf %52, %69 : vector<8x32xf32>
      %71 = vector.broadcast %68 : vector<8x1xf32> to vector<8x32xf32>
      %72 = arith.mulf %70, %71 : vector<8x32xf32>
      %73 = vector.broadcast %53 : vector<1x32xf32> to vector<8x32xf32>
      %74 = arith.mulf %72, %73 : vector<8x32xf32>
      %75 = vector.broadcast %54 : vector<1x32xf32> to vector<8x32xf32>
      %76 = arith.addf %74, %75 : vector<8x32xf32>
      %77 = arith.truncf %76 : vector<8x32xf32> to vector<8x32xbf16>
      %c0_36 = arith.constant 0 : index
      %c0_37 = arith.constant 0 : index
      %78 = vector.load %arg9[%c0_36, %c0_37] : memref<32x128xbf16, #tpu.memory_space<vmem>>, vector<32x128xbf16>
      %cst_38 = arith.constant dense<0.000000e+00> : vector<8x128xf32>
      %79 = tpu.matmul %77, %78, %cst_38 {dimension_numbers = #tpu.dot_dimension_numbers<[1], [0], [0], [1], [0, 0, 1, 1], [], []>} : vector<8x32xbf16>, vector<32x128xbf16>, vector<8x128xf32> -> vector<8x128xf32>
      %c0_39 = arith.constant 0 : index
      %c0_40 = arith.constant 0 : index
      %80 = vector.load %arg10[%c0_39, %c0_40] : memref<1x128xf32, #tpu.memory_space<vmem>>, vector<1x128xf32>
      %81 = vector.broadcast %80 : vector<1x128xf32> to vector<8x128xf32>
      %82 = arith.addf %79, %81 : vector<8x128xf32>
      %cst_41 = arith.constant 0.000000e+00 : f32
      %83 = vector.broadcast %cst_41 : f32 to vector<8x128xf32>
      %84 = arith.maximumf %82, %83 : vector<8x128xf32>
      %85 = arith.truncf %84 : vector<8x128xf32> to vector<8x128xbf16>
      %c0_42 = arith.constant 0 : index
      %c0_43 = arith.constant 0 : index
      %86 = vector.load %arg11[%c0_42, %c0_43] : memref<128x32xbf16, #tpu.memory_space<vmem>>, vector<128x32xbf16>
      %cst_44 = arith.constant dense<0.000000e+00> : vector<8x32xf32>
      %87 = tpu.matmul %85, %86, %cst_44 {dimension_numbers = #tpu.dot_dimension_numbers<[1], [0], [0], [1], [0, 0, 1, 1], [], []>} : vector<8x128xbf16>, vector<128x32xbf16>, vector<8x32xf32> -> vector<8x32xf32>
      %c0_45 = arith.constant 0 : index
      %c0_46 = arith.constant 0 : index
      %88 = vector.load %arg12[%c0_45, %c0_46] : memref<1x32xf32, #tpu.memory_space<vmem>>, vector<1x32xf32>
      %89 = vector.broadcast %88 : vector<1x32xf32> to vector<8x32xf32>
      %90 = arith.addf %87, %89 : vector<8x32xf32>
      %91 = arith.addf %76, %90 : vector<8x32xf32>
      %c0_47 = arith.constant 0 : index
      %c0_48 = arith.constant 0 : index
      %92 = vector.load %arg13[%c0_47, %c0_48] : memref<1x32xf32, #tpu.memory_space<vmem>>, vector<1x32xf32>
      %c0_49 = arith.constant 0 : index
      %c0_50 = arith.constant 0 : index
      %93 = vector.load %arg14[%c0_49, %c0_50] : memref<1x32xf32, #tpu.memory_space<vmem>>, vector<1x32xf32>
      %cst_51 = arith.constant dense<0.000000e+00> : vector<8xf32>
      %94 = vector.multi_reduction <add>, %91, %cst_51 [1] : vector<8x32xf32> to vector<8xf32>
      %95 = vector.shape_cast %94 : vector<8xf32> to vector<8x1xf32>
      %cst_52 = arith.constant 3.200000e+01 : f32
      %96 = vector.broadcast %cst_52 : f32 to vector<8x1xf32>
      %97 = arith.divf %95, %96 : vector<8x1xf32>
      %98 = vector.broadcast %97 : vector<8x1xf32> to vector<8x32xf32>
      %99 = arith.subf %91, %98 : vector<8x32xf32>
      %100 = arith.mulf %99, %99 : vector<8x32xf32>
      %cst_53 = arith.constant dense<0.000000e+00> : vector<8xf32>
      %101 = vector.multi_reduction <add>, %100, %cst_53 [1] : vector<8x32xf32> to vector<8xf32>
      %102 = vector.shape_cast %101 : vector<8xf32> to vector<8x1xf32>
      %cst_54 = arith.constant 3.200000e+01 : f32
      %103 = vector.broadcast %cst_54 : f32 to vector<8x1xf32>
      %104 = arith.divf %102, %103 : vector<8x1xf32>
      %cst_55 = arith.constant 9.99999974E-6 : f32
      %105 = vector.broadcast %cst_55 : f32 to vector<8x1xf32>
      %106 = arith.addf %104, %105 : vector<8x1xf32>
      %107 = math.rsqrt %106 : vector<8x1xf32>
      %108 = vector.broadcast %97 : vector<8x1xf32> to vector<8x32xf32>
      %109 = arith.subf %91, %108 : vector<8x32xf32>
      %110 = vector.broadcast %107 : vector<8x1xf32> to vector<8x32xf32>
      %111 = arith.mulf %109, %110 : vector<8x32xf32>
      %112 = vector.broadcast %92 : vector<1x32xf32> to vector<8x32xf32>
      %113 = arith.mulf %111, %112 : vector<8x32xf32>
      %114 = vector.broadcast %93 : vector<1x32xf32> to vector<8x32xf32>
      %115 = arith.addf %113, %114 : vector<8x32xf32>
      %c0_56 = arith.constant 0 : index
      %c0_57 = arith.constant 0 : index
      %c0_58 = arith.constant 0 : index
      %116 = vector.load %arg15[%c0_56, %c0_57, %c0_58] : memref<1x8x32xf32, #tpu.memory_space<vmem>>, vector<1x8x32xf32>
      %117 = vector.shape_cast %116 : vector<1x8x32xf32> to vector<8x32xf32>
      %118 = vector.shape_cast %115 : vector<8x32xf32> to vector<1x8x32xf32>
      tpu.vector_store %arg15[%c0_56, %c0_57, %c0_58], %118 {strides = array<i32>} : memref<1x8x32xf32, #tpu.memory_space<vmem>>, vector<1x8x32xf32>,
    } else {
    }
    return
  }
  func.func @transform_0(%arg0: i32, %arg1: i32) -> (i32, i32, i32) {
    %c0_i32 = arith.constant 0 : i32
    %c0_i32_0 = arith.constant 0 : i32
    %c0_i32_1 = arith.constant 0 : i32
    return %arg0, %c0_i32, %c0_i32_0 : i32, i32, i32
  }
  func.func @transform_1(%arg0: i32, %arg1: i32) -> (i32, i32, i32) {
    %c0_i32 = arith.constant 0 : i32
    %c0_i32_0 = arith.constant 0 : i32
    %c0_i32_1 = arith.constant 0 : i32
    %c0_i32_2 = arith.constant 0 : i32
    return %c0_i32, %c0_i32_0, %c0_i32_1 : i32, i32, i32
  }
  func.func @transform_2(%arg0: i32, %arg1: i32) -> (i32, i32, i32) {
    %c0_i32 = arith.constant 0 : i32
    %c0_i32_0 = arith.constant 0 : i32
    %c0_i32_1 = arith.constant 0 : i32
    %c0_i32_2 = arith.constant 0 : i32
    return %c0_i32, %c0_i32_0, %c0_i32_1 : i32, i32, i32
  }
  func.func @transform_3(%arg0: i32, %arg1: i32) -> (i32, i32, i32) {
    %c0_i32 = arith.constant 0 : i32
    %c0_i32_0 = arith.constant 0 : i32
    %c0_i32_1 = arith.constant 0 : i32
    %c0_i32_2 = arith.constant 0 : i32
    return %c0_i32, %c0_i32_0, %c0_i32_1 : i32, i32, i32
  }
  func.func @transform_4(%arg0: i32, %arg1: i32) -> (i32, i32) {
    %c0_i32 = arith.constant 0 : i32
    %c0_i32_0 = arith.constant 0 : i32
    %c0_i32_1 = arith.constant 0 : i32
    return %c0_i32, %c0_i32_0 : i32, i32
  }
  func.func @transform_5(%arg0: i32, %arg1: i32) -> (i32, i32) {
    %c0_i32 = arith.constant 0 : i32
    %c0_i32_0 = arith.constant 0 : i32
    %c0_i32_1 = arith.constant 0 : i32
    return %c0_i32, %c0_i32_0 : i32, i32
  }
  func.func @transform_6(%arg0: i32, %arg1: i32) -> (i32, i32) {
    %c0_i32 = arith.constant 0 : i32
    %c0_i32_0 = arith.constant 0 : i32
    %c0_i32_1 = arith.constant 0 : i32
    return %c0_i32, %c0_i32_0 : i32, i32
  }
  func.func @transform_7(%arg0: i32, %arg1: i32) -> (i32, i32) {
    %c0_i32 = arith.constant 0 : i32
    %c0_i32_0 = arith.constant 0 : i32
    %c0_i32_1 = arith.constant 0 : i32
    return %c0_i32, %c0_i32_0 : i32, i32
  }
  func.func @transform_8(%arg0: i32, %arg1: i32) -> (i32, i32) {
    %c0_i32 = arith.constant 0 : i32
    %c0_i32_0 = arith.constant 0 : i32
    %c0_i32_1 = arith.constant 0 : i32
    return %c0_i32, %c0_i32_0 : i32, i32
  }
  func.func @transform_9(%arg0: i32, %arg1: i32) -> (i32, i32) {
    %c0_i32 = arith.constant 0 : i32
    %c0_i32_0 = arith.constant 0 : i32
    %c0_i32_1 = arith.constant 0 : i32
    return %c0_i32, %c0_i32_0 : i32, i32
  }
  func.func @transform_10(%arg0: i32, %arg1: i32) -> (i32, i32) {
    %c0_i32 = arith.constant 0 : i32
    %c0_i32_0 = arith.constant 0 : i32
    %c0_i32_1 = arith.constant 0 : i32
    return %c0_i32, %c0_i32_0 : i32, i32
  }
  func.func @transform_11(%arg0: i32, %arg1: i32) -> (i32, i32) {
    %c0_i32 = arith.constant 0 : i32
    %c0_i32_0 = arith.constant 0 : i32
    %c0_i32_1 = arith.constant 0 : i32
    return %c0_i32, %c0_i32_0 : i32, i32
  }
  func.func @transform_12(%arg0: i32, %arg1: i32) -> (i32, i32) {
    %c0_i32 = arith.constant 0 : i32
    %c0_i32_0 = arith.constant 0 : i32
    %c0_i32_1 = arith.constant 0 : i32
    return %c0_i32, %c0_i32_0 : i32, i32
  }
  func.func @transform_13(%arg0: i32, %arg1: i32) -> (i32, i32, i32) {
    %c0_i32 = arith.constant 0 : i32
    %c0_i32_0 = arith.constant 0 : i32
    %c0_i32_1 = arith.constant 0 : i32
    return %arg0, %c0_i32, %c0_i32_0 : i32, i32, i32
  }
  func.func @transform_14(%arg0: i32, %arg1: i32) -> (i32, i32, i32, i32) {
    %c0_i32 = arith.constant 0 : i32
    %c0_i32_0 = arith.constant 0 : i32
    %c0_i32_1 = arith.constant 0 : i32
    return %arg0, %arg1, %c0_i32, %c0_i32_0 : i32, i32, i32, i32
  }
}

</mosaic_0001>

<bundles_post_ra>
// kernel: tpu_custom_call.1
= control target key start
LH: loop header
LB: loop body
LE: loop exit
PB: predicated region body
PF: predicated region fallthrough
CT: control target
= control target key end

     0   :  { %s1921_s0 = inlined_call_operand.vmem [shape: f32[2,8,32], index: 0, kind: input, shape index: {}]   ;;  %s1922_s1 = inlined_call_operand.vmem [shape: bf16[4,32,24], index: 1, kind: input, shape index: {}]   ;;  %s1923_s2 = inlined_call_operand.vmem [shape: f32[4,1,24], index: 2, kind: input, shape index: {}]   ;;  %s1924_s3 = inlined_call_operand.vmem [shape: bf16[4,8,32], index: 3, kind: input, shape index: {}]   ;;  %s1925_s4 = inlined_call_operand.vmem [shape: f32[1,32], index: 4, kind: input, shape index: {}]   ;;  %s1926_s5 = inlined_call_operand.vmem [shape: f32[1,32], index: 5, kind: input, shape index: {}]   ;;  %s1927_s6 = inlined_call_operand.vmem [shape: f32[1,32], index: 6, kind: input, shape index: {}]   ;;  %s1928_s7 = inlined_call_operand.vmem [shape: bf16[32,128], index: 7, kind: input, shape index: {}]   ;;  %s1929_s8 = inlined_call_operand.vmem [shape: f32[1,128], index: 8, kind: input, shape index: {}]   ;;  %s1930_s9 = inlined_call_operand.vmem [shape: bf16[128,32], index: 9, kind: input, shape index: {}]   ;;  %s1931_s10 = inlined_call_operand.vmem [shape: f32[1,32], index: 10, kind: input, shape index: {}]   ;;  %s1932_s11 = inlined_call_operand.vmem [shape: f32[1,32], index: 11, kind: input, shape index: {}]   ;;  %s1933_s12 = inlined_call_operand.vmem [shape: f32[1,32], index: 12, kind: input, shape index: {}]   ;;  %s1934_s13 = inlined_call_operand.hbm [shape: f32[2,8,32], index: 13, kind: output, shape index: {0}]   ;;  %s1935_s14 = inlined_call_operand.hbm [shape: f32[2,4,8,8], index: 14, kind: output, shape index: {1}]  }
   0x1   :  { %1948 = sst [smem:[#allocation16_spill]] %s1921_s0 }
   0x2   :  { %1949 = sst [smem:[#allocation17_spill]] %s1922_s1 }
   0x3   :  { %1950 = sst [smem:[#allocation18_spill]] %s1923_s2 }
   0x4   :  { %1951 = sst [smem:[#allocation19_spill]] %s1924_s3 }
   0x5   :  { %1952 = sst [smem:[#allocation20_spill]] %s1925_s4 }
   0x6   :  { %1953 = sst [smem:[#allocation21_spill]] %s1926_s5 }
   0x7   :  { %1954 = sst [smem:[#allocation22_spill]] %s1927_s6 }
   0x8   :  { %1955 = sst [smem:[#allocation23_spill]] %s1928_s7 }
   0x9   :  { %1956 = sst [smem:[#allocation24_spill]] %s1929_s8 }
   0xa   :  { %1957 = sst [smem:[#allocation25_spill]] %s1930_s9 }
   0xb   :  { %1958 = sst [smem:[#allocation26_spill]] %s1931_s10 }
   0xc   :  { %1959 = sst [smem:[#allocation27_spill]] %s1932_s11 }
   0xd   :  { %1960 = sst [smem:[#allocation28_spill]] %s1933_s12 }
   0xe   :  { %1961 = sst [smem:[#allocation29_spill]] %s1934_s13 }
   0xf   :  { %1962 = sst [smem:[#allocation30_spill]] %s1935_s14 }
  0x10   :  { %20 = vsyncpa [#allocation4], 0 }
  0x11   :  { %22 = vsyncpa [#allocation4 + $0x1], 0 }
  0x12   :  { %23 = vsyncpa [#allocation6], 0 }
  0x13   :  { %25 = vsyncpa [#allocation6 + $0x1], 0  ;;  %s1612_s29 = smov 0   ;;  %s1614_s30 = smov 0  }
  0x14   :  { %s1616_s15 = smov 0   ;;  %s1618_s16 = smov 0  }
  0x15   :  { %s1620_s17 = smov 0   ;;  %s1622_s18 = smov 0  }
  0x16   :  { %s1624_s19 = smov 0   ;;  %s1626_s20 = smov 0  }
  0x17   :  { %s1628_s21 = smov 0   ;;  %s1630_s22 = smov 0  }
  0x18   :  { %s1632_s23 = smov 0  }
  0x19 LB: > { %1963 = sst [smem:[#allocation9_spill]] %s1498_s16  ;;  %s1132_s24 = sadd.s32 4294967295, %s1526_s23   ;;  %s1526_s23 = sphi %s1632_s23, %s31_s23   ;;  %s1522_s22 = sphi %s1630_s22, %s2004_s22   ;;  %s1518_s21 = sphi %s1628_s21, %s2011_s21   ;;  %s1514_s20 = sphi %s1626_s20, %s2002_s20   ;;  %s1510_s19 = sphi %s1624_s19, %s2001_s19   ;;  %s1506_s18 = sphi %s1622_s18, %s2010_s18   ;;  %s1502_s17 = sphi %s1620_s17, %s2009_s17   ;;  %s1498_s16 = sphi %s1618_s16, %s2008_s16   ;;  %s1494_s15 = sphi %s1616_s15, %s2007_s15   ;;  %s1490_s30 = sphi %s1614_s30, %s2006_s30   ;;  %s1486_s29 = sphi %s1612_s29, %s2005_s29  }
  0x1a   : > { %1964 = sst [smem:[#allocation10_spill]] %s1518_s21  ;;  %s1133_s25 = sadd.s32 4294967294, %s1526_s23  }
  0x1b   : > { %1965 = sst [smem:[#allocation11_spill]] %s1522_s22  ;;  %s40_s26 = sadd.s32 1, %s1518_s21 }
  0x1c   : > { %s43_s27 = sadd.s32 1, %s1522_s22  ;;  %p41_p0 = scmp.ge.s32.totalorder %s40_s26, 4 }
  0x1d   : > { %s328_s28 = sadd.s32 1, %s1506_s18  ;;  %p338_p1 = scmp.ne.s32.totalorder %s1506_s18, %s1502_s17 }
  0x1e   : > { %p1674_p2 = scmp.eq.s32.totalorder %s1132_s24, 7  ;;  %s2013_s26 = smov (%p41_p0, %s40_s26), 0 }
  0x1f   : > { %1967 = sst [smem:[#allocation12_spill]] %s2013_s26  ;;  %s2015_s27 = smov (!%p41_p0, %s43_s27), %s1522_s22 }
  0x20   : > { %p1683_p3 = por %p1674_p2, %p338_p1  ;;  %p344_p4 = scmp.ne.s32.totalorder %s1502_s17, %s1498_s16 }
  0x21   : > { %p45_p5 = scmp.ge.s32.totalorder %s2015_s27, 2  ;;  %p1689_p6 = scmp.eq.s32.totalorder %s1133_s25, 7 }
  0x22   : > { %s1968_s13 = scalar_select %p1683_p3, 1, 0 }
  0x23   : > { %s352_s12 = ssub.s32 %s1518_s21, %s2013_s26  ;;  %s356_s11 = sadd.s32 1, %s1494_s15 }
  0x24   : > { %1969 = sst [smem:[#allocation13_spill]] %s1968_s13  ;;  %s2017_s27 = smov (%p45_p5, %s2015_s27), 0 }
  0x25   : > { %1971 = sst [smem:[#allocation14_spill]] %s2017_s27  ;;  %p1700_p7 = por %p1689_p6, %p344_p4 }
  0x26   : > { %p366_p8 = scmp.ne.s32.totalorder %s1494_s15, %s1490_s30  ;;  %s325_s16 = ssub.s32 %s1522_s22, %s2017_s27 }
  0x27   : > { %s1972_s10 = scalar_select %p1700_p7, 1, 0 }
  0x28   : > { %p372_p9 = scmp.ne.s32.totalorder %s1490_s30, %s1486_s29  ;;  %p326_p10 = scmp.eq.s32.totalorder %s325_s16, 0 }
  0x29   : > { %s353_s25 = sor.u32 %s352_s12, %s325_s16  ;;  %p1712_p12 = por %p366_p8, %p1674_p2 }
  0x2a   : > { %p354_p11 = scmp.eq.s32.totalorder %s353_s25, 0  ;;  %p1724_p13 = por %p372_p9, %p1689_p6 }
  0x2b   : > { %s1717_s26 = scalar_select %p326_p10, %s1506_s18, %s328_s28  }
  0x2c   : > { %s1720_s21 = scalar_select %p354_p11, %s1494_s15, %s356_s11  }
  0x2d   : > { %1974 = sst [smem:[#allocation15_spill]] %s1717_s26  ;;  %p1136_p0 = scmp.ge.s32.totalorder %s1526_s23, 1 }
  0x2e   : > { %s1975_s8 = scalar_select %p1724_p13, 1, 0 }
  0x2f   : > { %p434_p1 = scmp.lt.s32.totalorder %s1526_s23, 9 }
  0x31   : > { %p435_p4 = pnand %p1136_p0, %p434_p1 }
  0x32   : > { %s1945_s12 = sand.u32 (!%p435_p4), 1, %s1502_s17   ;;  %s1946_s14 = sand.u32 (!%p435_p4), 1, %s1490_s30  }
  0x33   : > { %438 = sbr.rel (%p435_p4) target bundleno = 2375 (0x947), region = 72  ;;  %s1734_s11 = sshll.u32 (!%p435_p4), %s1945_s12, 3 }
  0x34   : > { %s1738_s16 = sshll.u32 (!%p435_p4), %s1946_s14, 3  ;;  %p484_p2 = scmp.lt.s32.totalorder (!%p435_p4), %s1514_s20, 1 }
  0x35   : > { %s1976_s0 = sld [smem:[#allocation16_spill]] (!%p435_p4)  ;;  %s1947_s12 = scalar_lea.vmem (!%p435_p4), [#allocation5], %s1738_s16 }
  0x36   : > { %p1140_p5 = scmp.ne.s32.totalorder (!%p435_p4), %s1510_s19, 0 }
  0x38   : > { %s485_s28 = scalar_select %p484_p2, %s1514_s20, 1 }
  0x39   : > { %494 = sbr.rel (%p1140_p5) target bundleno = 64 (0x40), region = 76 }
  0x3a   : > { %s1139_s24 = sshll.u32 %s485_s28, 3 }
  0x3b   : > { %s487_s22 = scalar_lea.vmem %s1976_s0, %s1139_s24 }
  0x3c   : > { %v1745_v0 = vld [vmem:[%s487_s22] sm:$0xff] }
  0x3d   : > { %v490_v1 = vpack.c.bf16 %v1745_v0, %v1745_v0 }
  0x3e   : > { %vm495_vm0 = vcmask 261120   ;;  %v1528_v2 = vmov 0.0  }
  0x3f   : > { %496 = vst.msk [vmem:[#allocation2] sm:$0xff] %vm495_vm0, %v1528_v2 }
  0x40 PF: > { %s1177_s28 = sshll.u32 %s1510_s19, 4  ;;  %v1529_v3 = vmov 0.0   ;;  %s1977_s1 = sld [smem:[#allocation17_spill]]  ;;  %vm1530_vm1 = vmmov 0   ;;  %vm524_vm2 = vcmask 261120   ;;  %vm572_vm3 = vcmask 64512  }
  0x41   : > { %1199 = vmatprep.subr.bf16.mxu0 %v1529_v3  ;;  %1203 = vmatprep.mubr.msk.bf16.mxu0 %vm1530_vm1, %v1529_v3  ;;  %s1978_s2 = sld [smem:[#allocation18_spill]]  ;;  %s1531_s22 = smov 120   ;;  %vm637_vm4 = vcmask 1043456  }
  0x42   : > { %1207 = vmatprep.subr.bf16.mxu1 %v1529_v3  ;;  %1209 = vmatprep.mubr.msk.bf16.mxu1 %vm1530_vm1, %v1529_v3  ;;  %s1979_s3 = sld [smem:[#allocation19_spill]]  ;;  %p1151_p6 = scmp.ne.s32.totalorder %s1510_s19, 3 }
  0x43   : > { %s1980_s4 = sld [smem:[#allocation20_spill]] (!%p1151_p6)  ;;  %s1989_s14 = scalar_lea.vmem (!%p1151_p6), [#allocation3], %s1734_s11 }
  0x44   : > { %s1981_s7 = sld [smem:[#allocation23_spill]] (!%p1151_p6) }
  0x45   : > { %s1982_s9 = sld [smem:[#allocation25_spill]] (!%p1151_p6) }
  0x46   : > { %s499_s24 = scalar_lea.vmem %s1977_s1, %s1177_s28  ;;  %v681_v38 = vld [vmem:[#allocation2] sm:$0xff]  ;;  %s1983_s5 = sld [smem:[#allocation21_spill]] (!%p1151_p6) }
  0x47   : > { %v1360_v4 = vld [vmem:[%s499_s24 + $0x8] sm:$0xff]   ;;  %v1361_v5 = vld [vmem:[%s499_s24] sm:$0xff]   ;;  %s504_s28 = scalar_lea.vmem %s1978_s2, %s1510_s19  ;;  %s1149_s24 = sshll.u32 %s1510_s19, 2 }
  0x48   : > { %1200 = vmatpush3.bf16.msra.mxu0 %v1360_v4  ;;  %v1143_v6 = vld [vmem:[%s504_s28] ss:$0 sm:$0xff]  ;;  %s684_s28 = scalar_lea.vmem %s1979_s3, %s1149_s24  ;;  %s1984_s6 = sld [smem:[#allocation22_spill]] (!%p1151_p6) }
  0x49   : > { %1201 = vmatprep.subr.bf16.mxu0 %v1529_v3  ;;  %v685_v25 = vld [vmem:[%s684_s28] sm:$0xf]  ;;  %s1986_s25 = sld [smem:[#allocation26_spill]] (!%p1151_p6) }
  0x4a   : > { %v690_v26 = vsel %vm637_vm4, %v685_v25, 0  ;;  %s1987_s26 = sld [smem:[#allocation27_spill]] (!%p1151_p6) }
  0x4b   : > { %s1988_s24 = sld [smem:[#allocation28_spill]] (!%p1151_p6) }
  0x4c   : > { %1202 = vmatpush3.bf16.msra.mxu0 %v1361_v5 }
  0x4d   : > { %1213 = vmatprep.subr.bf16.mxu0 %v1529_v3 }
  0x4f   : > { %1204 = vmatmul.mubr.msk.bf16.vlgmr.msra.gmra.mxu0 %vm524_vm2, %v490_v1 }
  0x50   : > { %1215 = vmatprep.mubr.msk.bf16.mxu0 %vm1530_vm1, %v1529_v3 }
 0x10f   : > { %v562_v7 = vpop.f32.mrf.mxu0 }
 0x110   : > { %v563_v8 = vadd.f32 %v1143_v6, %v562_v7 }
 0x111   : > { %v1205_v9 = vpop.f32.mrf.mxu0 }
 0x112   : > { %v568_v10 = vpack.c.bf16 %v563_v8, %v563_v8 }
 0x113   : > { %v565_v11 = vpop.f32.mrf.mxu0 }
 0x114   : > { %570 = vrot.lane.b32.xlu0 %v568_v10, %s1531_s22  ;;  %s1532_s22 = smov 112  }
 0x115   : > { %v1206_v12 = vpop.f32.mrf.mxu0 }
 0x186   : > { %v571_v13 = vpop.permute.xlu0 %570 }
 0x187   : > { %v577_v14 = vsel %vm572_vm3, %v571_v13, 0 }
 0x188   : > { %1208 = vmatpush3.bf16.xpose.msra.mxu1 %v577_v14 }
 0x189   : > { %1219 = vmatprep.subr.bf16.mxu1 %v1529_v3 }
 0x18f   : > { %1210 = vmatmul.mubr.msk.bf16.vlgmr.msra.gmra.mxu1 %vm572_vm3, %v568_v10 }
 0x190   : > { %1221 = vmatprep.mubr.msk.bf16.mxu1 %vm1530_vm1, %v1529_v3  ;;  %1220 = vmatpush3.bf16.msra.mxu1 %v690_v26 }
 0x24f   : > { %v613_v15 = vpop.f32.mrf.mxu1 }
 0x250   : > { %v619_v16 = vsel %vm572_vm3, %v613_v15, -inf }
 0x251   : > { %620 = vmax.xlane.f32.xlu0 %v619_v16  ;;  %v1211_v17 = vpop.f32.mrf.mxu1 }
 0x253   : > { %v616_v18 = vpop.f32.mrf.mxu1 }
 0x255   : > { %v1212_v19 = vpop.f32.mrf.mxu1 }
 0x2da   : > { %v621_v20 = vpop.xlane.xlu0 %620 }
 0x2db   : > { %v622_v21 = vsub.f32 %v613_v15, %v621_v20 }
 0x2dd   : > { %v623_v22 = vmul.f32 1.442695, %v622_v21 }
 0x2df   : > { %1362 = vpow2.f32 %v623_v22 }
 0x2ec   : > { %v1363_v23 = vpop.eup %1362 }
 0x2ed   : > { %v625_v24 = vsel %vm572_vm3, %v1363_v23, 0.0 }
 0x2ee   : > { %626 = vadd.xlane.f32.xlu1 %v625_v24 }
 0x2ff   : > { %632 = vrot.lane.b32.xlu1 %v568_v10, %s1532_s22  ;;  %s1985_s22 = sld [smem:[#allocation24_spill]] (!%p1151_p6) }
 0x377   : > { %v627_v27 = vpop.xlane.xlu1 %626 }
 0x378   : > { %1364 = vrcp.f32 %v627_v27 }
 0x37b   : > { %v633_v28 = vpop.permute.xlu1 %632 }
 0x37c   : > { %v639_v29 = vsel %vm637_vm4, %v633_v28, 0 }
 0x37d   : > { %1214 = vmatpush3.bf16.msra.mxu0 %v639_v29 }
 0x385   : > { %v1365_v30 = vpop.eup %1364 }
 0x386   : > { %v629_v31 = vmul.f32 %v1365_v30, %v1363_v23 }
 0x388   : > { %630 = vst.msk [vmem:[%s1947_s12] sm:$0xff] %vm572_vm3, %v629_v31  ;;  %v631_v32 = vpack.c.bf16 %v629_v31, %v629_v31 }
 0x38a   : > { %1216 = vmatmul.mubr.msk.bf16.vlgmr.msra.gmra.mxu0 %vm572_vm3, %v631_v32 }
 0x44a   : > { %v675_v33 = vpop.f32.mrf.mxu0 }
 0x44b   : > { %v682_v34 = vpack.c.bf16 %v675_v33, %v675_v33 }
 0x44c   : > { %v1217_v35 = vpop.f32.mrf.mxu0 }
 0x44d   : > { %1222 = vmatmul.mubr.msk.bf16.vlgmr.msra.gmra.mxu1 %vm572_vm3, %v682_v34 }
 0x44e   : > { %v678_v36 = vpop.f32.mrf.mxu0 }
 0x450   : > { %v1218_v37 = vpop.f32.mrf.mxu0 }
 0x50d   : > { %v726_v39 = vpop.f32.mrf.mxu1 }
 0x50e   : > { %v732_v40 = vadd.f32 %v726_v39, %v681_v38 }
 0x50f   : > { %v1223_v41 = vpop.f32.mrf.mxu1  ;;  %737 = sbr.rel (%p1151_p6) target bundleno = 2323 (0x913), region = 80 }
 0x510   : > { %733 = vst.msk [vmem:[#allocation2] sm:$0xff] %vm524_vm2, %v732_v40 }
 0x511   : > { %v729_v42 = vpop.f32.mrf.mxu1 }
 0x513   : > { %v1224_v43 = vpop.f32.mrf.mxu1 }
 0x514   : > { %v1152_v45 = vld [vmem:[%s1980_s4] ss:$0 sm:$0xff]  ;;  %v1366_v54 = vld [vmem:[%s1981_s7 + $0x8] sm:$0xff]   ;;  %v1533_v55 = vmov 0.0   ;;  %vm1534_vm5 = vmmov 0   ;;  %v1368_v57 = vld [vmem:[%s1982_s9 + $0x38] sm:$0xff]  }
 0x515   : > { %1225 = vmatprep.subr.bf16.mxu0 %v1533_v55  ;;  %1229 = vmatprep.mubr.msk.bf16.mxu0 %vm1534_vm5, %v1533_v55  ;;  %v1367_v56 = vld [vmem:[%s1981_s7] sm:$0xff]   ;;  %v1369_v58 = vld [vmem:[%s1982_s9 + $0x30] sm:$0xff]   ;;  %v1370_v59 = vld [vmem:[%s1982_s9 + $0x28] sm:$0xff]  }
 0x516   : > { %1226 = vmatpush3.bf16.msra.mxu0 %v1366_v54  ;;  %1233 = vmatprep.subr.bf16.mxu1 %v1533_v55  ;;  %v1371_v60 = vld [vmem:[%s1982_s9 + $0x20] sm:$0xff]   ;;  %v1372_v61 = vld [vmem:[%s1982_s9 + $0x18] sm:$0xff]   ;;  %v1373_v62 = vld [vmem:[%s1982_s9 + $0x10] sm:$0xff]  }
 0x517   : > { %v738_v44 = vld [vmem:[#allocation2] sm:$0xff]  ;;  %1227 = vmatprep.subr.bf16.mxu0 %v1533_v55  ;;  %1249 = vmatprep.mubr.msk.bf16.mxu1 %vm1534_vm5, %v1533_v55  ;;  %v1374_v9 = vld [vmem:[%s1982_s9 + $0x8] sm:$0xff]  }
 0x518   : > { %v746_v46 = vadd.f32 %v1152_v45, %v738_v44  ;;  %1234 = vmatpush3.bf16.msra.mxu1 %v1368_v57  ;;  %v1153_v3 = vld [vmem:[%s1983_s5] ss:$0 sm:$0xff] }
 0x519   : > { %1235 = vmatprep.subr.bf16.mxu1 %v1533_v55  ;;  %v1154_v5 = vld [vmem:[%s1984_s6] ss:$0 sm:$0xff] }
 0x51a   : > { %v747_v47 = vadd.f32 %v746_v46, %v1745_v0  ;;  %1228 = vmatpush3.bf16.msra.mxu0 %v1367_v56  ;;  %v1375_v10 = vld [vmem:[%s1982_s9] sm:$0xff]  }
 0x51b   : > { %v1155_v11 = vld [vmem:[%s1985_s22] ss:$0 sm:$0xff] }
 0x51c   : > { %v750_v48 = vsel %vm524_vm2, %v747_v47, 0.0  ;;  %1236 = vmatpush3.bf16.msra.mxu1 %v1369_v58  ;;  %v1159_v19 = vld [vmem:[%s1986_s25] ss:$0 sm:$0xff] }
 0x51d   : > { %751 = vadd.xlane.f32.xlu0 %v750_v48  ;;  %1237 = vmatprep.subr.bf16.mxu1 %v1533_v55  ;;  %v1168_v36 = vld [vmem:[%s1987_s26] ss:$0 sm:$0xff] }
 0x51e   : > { %v1169_v38 = vld [vmem:[%s1988_s24] ss:$0 sm:$0xff] }
 0x520   : > { %1238 = vmatpush3.bf16.msra.mxu1 %v1370_v59 }
 0x521   : > { %1239 = vmatprep.subr.bf16.mxu1 %v1533_v55 }
 0x524   : > { %1240 = vmatpush3.bf16.msra.mxu1 %v1371_v60 }
 0x525   : > { %1241 = vmatprep.subr.bf16.mxu1 %v1533_v55 }
 0x528   : > { %1242 = vmatpush3.bf16.msra.mxu1 %v1372_v61 }
 0x529   : > { %1243 = vmatprep.subr.bf16.mxu1 %v1533_v55 }
 0x52c   : > { %1244 = vmatpush3.bf16.msra.mxu1 %v1373_v62 }
 0x52d   : > { %1245 = vmatprep.subr.bf16.mxu1 %v1533_v55 }
 0x530   : > { %1246 = vmatpush3.bf16.msra.mxu1 %v1374_v9 }
 0x531   : > { %1247 = vmatprep.subr.bf16.mxu1 %v1533_v55 }
 0x534   : > { %1248 = vmatpush3.bf16.msra.mxu1 %v1375_v10 }
 0x5a6   : > { %v752_v49 = vpop.xlane.xlu0 %751 }
 0x5a7   : > { %v754_v50 = vmul.f32 0.03125, %v752_v49 }
 0x5a9   : > { %v755_v51 = vsub.f32 %v747_v47, %v754_v50 }
 0x5ab   : > { %v756_v52 = vmul.f32 %v755_v51, %v755_v51 }
 0x5ad   : > { %v757_v53 = vsel %vm524_vm2, %v756_v52, 0.0 }
 0x5ae   : > { %758 = vadd.xlane.f32.xlu0 %v757_v53 }
 0x637   : > { %v759_v63 = vpop.xlane.xlu0 %758 }
 0x638   : > { %v760_v0 = vmul.f32 0.03125, %v759_v63 }
 0x63a   : > { %v761_v1 = vadd.f32 1e-05, %v760_v0 }
 0x63c   : > { %1376 = vrsqrt.f32 %v761_v1 }
 0x649   : > { %v1377_v2 = vpop.eup %1376 }
 0x64a   : > { %v763_v4 = vmul.f32 %v1377_v2, %v755_v51 }
 0x64c   : > { %v770_v6 = vmul.f32 %v1153_v3, %v763_v4 }
 0x64e   : > { %v777_v7 = vadd.f32 %v1154_v5, %v770_v6 }
 0x650   : > { %v778_v8 = vpack.c.bf16 %v777_v7, %v777_v7 }
 0x652   : > { %1230 = vmatmul.mubr.msk.bf16.vlgmr.msra.gmra.mxu0 %vm524_vm2, %v778_v8 }
 0x712   : > { %v839_v12 = vpop.f32.mrf.mxu0 }
 0x713   : > { %v840_v13 = vadd.f32 %v1155_v11, %v839_v12 }
 0x714   : > { %v1231_v14 = vpop.f32.mrf.mxu0 }
 0x715   : > { %v845_v15 = vmax.f32 %v840_v13, 0.0 }
 0x716   : > { %v842_v16 = vpop.f32.mrf.mxu0 }
 0x717   : > { %v846_v17 = vpack.c.bf16 %v845_v15, %v845_v15 }
 0x718   : > { %v1232_v18 = vpop.f32.mrf.mxu0 }
 0x719   : > { %1250 = vmatmul.mubr.bf16.vlgmr.msra.gmra.mxu1 %v846_v17 }
 0x7d9   : > { %v952_v20 = vpop.f32.mrf.mxu1 }
 0x7da   : > { %v953_v21 = vadd.f32 %v1159_v19, %v952_v20 }
 0x7db   : > { %v1251_v22 = vpop.f32.mrf.mxu1 }
 0x7dc   : > { %v958_v23 = vadd.f32 %v953_v21, %v777_v7 }
 0x7dd   : > { %v955_v24 = vpop.f32.mrf.mxu1 }
 0x7de   : > { %v961_v25 = vsel %vm524_vm2, %v958_v23, 0.0 }
 0x7df   : > { %962 = vadd.xlane.f32.xlu1 %v961_v25  ;;  %v1252_v26 = vpop.f32.mrf.mxu1 }
 0x868   : > { %v963_v27 = vpop.xlane.xlu1 %962 }
 0x869   : > { %v964_v28 = vmul.f32 0.03125, %v963_v27 }
 0x86b   : > { %v965_v29 = vsub.f32 %v958_v23, %v964_v28 }
 0x86d   : > { %v966_v30 = vmul.f32 %v965_v29, %v965_v29 }
 0x86f   : > { %v967_v31 = vsel %vm524_vm2, %v966_v30, 0.0 }
 0x870   : > { %968 = vadd.xlane.f32.xlu1 %v967_v31 }
 0x8f9   : > { %v969_v32 = vpop.xlane.xlu1 %968 }
 0x8fa   : > { %v970_v33 = vmul.f32 0.03125, %v969_v32 }
 0x8fc   : > { %v971_v34 = vadd.f32 1e-05, %v970_v33 }
 0x8fe   : > { %1378 = vrsqrt.f32 %v971_v34 }
 0x90b   : > { %v1379_v35 = vpop.eup %1378 }
 0x90c   : > { %v973_v37 = vmul.f32 %v1379_v35, %v965_v29 }
 0x90e   : > { %v980_v39 = vmul.f32 %v1168_v36, %v973_v37 }
 0x910   : > { %v987_v40 = vadd.f32 %v1169_v38, %v980_v39 }
 0x912   : > { %988 = vst.msk [vmem:[%s1989_s14] sm:$0xff] %vm524_vm2, %v987_v40 }
 0x913 PF: > { %s1172_s0 = sshll.u32 %s1514_s20, 7  ;;  %s1991_s27 = sld [smem:[#allocation29_spill]] }
 0x914   : > { %s1992_s26 = scalar_lea.vmem [#allocation3], %s1734_s11  ;;  %s1993_s12 = sand.u32 1, %s1502_s17  }
 0x915   : > { %s1008_s3 = sshll.u32 %s1992_s26, 4  ;;  %s990_s22 = scalar_lea.sflag [#allocation4], %s1993_s12  ;;  %s1009_s3 = int_to_ptr.vmem [resolvable:$true] %s1008_s3 }
 0x916   : > { %s1380_s24 = scalar_lea.vmem %s1009_s3, 128  ;;  %s1535_s14 = smov [#allocation3]  }
 0x917   : > { %p1381_p8 = scmp.ne.s32.totalorder %s1009_s3, %s1380_s24  ;;  %s1384_s4 = sshll.u32 %s1535_s14, 4  ;;  %s1385_s4 = int_to_ptr.vmem [resolvable:$false] %s1384_s4 }
 0x918   : > { %s1386_s5 = scalar_lea.vmem %s1385_s4, 256  ;;  %p1387_p11 = scmp.lt.s32.totalorder %s1009_s3, %s1385_s4 }
 0x919   : > { %s1006_s28 = scalar_lea.hbm %s1991_s27, %s1172_s0  ;;  %p1382_p9 = pnand %p1381_p8, %p1683_p3 }
 0x91a   : > { %p1388_p0 = scmp.lt.s32.totalorder %s1386_s5, %s1380_s24 }
 0x91b   : > { %p1383_p10 = pneg %p1382_p9 }
 0x91c   : > { %p1389_p1 = por %p1388_p0, %p1387_p11 }
 0x91e   : > { %p1390_p4 = pnand %p1389_p1, %p1383_p10 }
 0x920   : > { %1393 = shalt.err (!%p1390_p4)
}
 0x921   : > { %s1394_s0 = scalar_lea.hbm %s1006_s28, 128  ;;  %s1398_s11 = scalar_lea.hbm %s1991_s27, 256 }
 0x922   : > { %p1395_p2 = scmp.ne.s32.totalorder %s1006_s28, %s1394_s0  ;;  %p1399_p8 = scmp.lt.s32.totalorder %s1006_s28, %s1991_s27 }
 0x923   : > { %p1400_p9 = scmp.lt.s32.totalorder %s1398_s11, %s1394_s0 }
 0x924   : > { %p1396_p5 = pnand %p1395_p2, %p1683_p3 }
 0x925   : > { %p1401_p13 = por %p1400_p9, %p1399_p8 }
 0x926   : > { %p1397_p6 = pneg %p1396_p5 }
 0x928   : > { %p1402_p7 = pnand %p1401_p13, %p1397_p6 }
 0x92a   : > { %1405 = shalt.err (!%p1402_p7)
}
 0x92b   : > { %1253 = dma.vmem_to_hbm [thread:$0]  (%p1683_p3), %s1009_s3, 128, %s1006_s28, %s990_s22  }
 0x92c   : > { %s1173_s4 = sshll.u32 %s1514_s20, 2  ;;  %s1994_s5 = scalar_lea.vmem [#allocation5], %s1738_s16 }
 0x92d   : > { %s1023_s24 = sshll.u32 %s1994_s5, 4  ;;  %s1019_s14 = sadd.s32 %s1510_s19, %s1173_s4  ;;  %s1024_s24 = int_to_ptr.vmem [resolvable:$true] %s1023_s24 }
 0x92e   : > { %s1174_s1 = sshll.u32 %s1019_s14, 7  ;;  %s1995_s0 = sld [smem:[#allocation30_spill]] }
 0x92f   : > { %s1996_s12 = sand.u32 1, %s1490_s30   ;;  %s1406_s7 = scalar_lea.vmem %s1024_s24, 128 }
 0x930   : > { %s995_s6 = scalar_lea.sflag [#allocation6], %s1996_s12  ;;  %p1407_p7 = scmp.ne.s32.totalorder %s1024_s24, %s1406_s7 }
 0x931   : > { %s1536_s25 = smov [#allocation5]  }
 0x932   : > { %p1408_p13 = pnand %p1407_p7, %p1712_p12  ;;  %s1410_s9 = sshll.u32 %s1536_s25, 4  ;;  %s1411_s9 = int_to_ptr.vmem [resolvable:$false] %s1410_s9 }
 0x933   : > { %s1412_s3 = scalar_lea.vmem %s1411_s9, 256  ;;  %p1413_p3 = scmp.lt.s32.totalorder %s1024_s24, %s1411_s9 }
 0x934   : > { %s1021_s11 = scalar_lea.hbm %s1995_s0, %s1174_s1  ;;  %p1409_p10 = pneg %p1408_p13 }
 0x935   : > { %p1414_p11 = scmp.lt.s32.totalorder %s1412_s3, %s1406_s7 }
 0x937   : > { %p1415_p0 = por %p1414_p11, %p1413_p3 }
 0x939   : > { %p1416_p1 = pnand %p1415_p0, %p1409_p10 }
 0x93b   : > { %1419 = shalt.err (!%p1416_p1)
}
 0x93c   : > { %s1420_s19 = scalar_lea.hbm %s1021_s11, 128  ;;  %s1424_s28 = scalar_lea.hbm %s1995_s0, 1024 }
 0x93d   : > { %p1421_p4 = scmp.ne.s32.totalorder %s1021_s11, %s1420_s19  ;;  %p1425_p6 = scmp.lt.s32.totalorder %s1021_s11, %s1995_s0 }
 0x93e   : > { %p1426_p8 = scmp.lt.s32.totalorder %s1424_s28, %s1420_s19 }
 0x93f   : > { %p1422_p2 = pnand %p1421_p4, %p1712_p12 }
 0x940   : > { %p1427_p9 = por %p1426_p8, %p1425_p6 }
 0x941   : > { %p1423_p5 = pneg %p1422_p2 }
 0x943   : > { %p1428_p7 = pnand %p1427_p9, %p1423_p5 }
 0x945   : > { %1431 = shalt.err (!%p1428_p7)
}
 0x946   : > { %1254 = dma.vmem_to_hbm [thread:$0]  (%p1712_p12), %s1024_s24, 128, %s1021_s11, %s995_s6  }
 0x947 PF: > { %s1997_s7 = sld [smem:[#allocation9_spill]]  ;;  %p1264_p13 = scmp.ge.s32.totalorder %s1526_s23, 2 }
 0x948   : > { %p1998_p10 = scmp.ne.s32.totalorder %s1972_s10, 0 }
 0x94a   : > { %p1258_p3 = pnand %p1264_p13, %p1998_p10 }
 0x94c   : > { %p1259_p11 = pneg %p1258_p3 }
 0x94d   : > { %s1035_s9 = sand.u32 1, %s1997_s7  }
 0x94e   : > { %s1036_s5 = scalar_lea.sflag [#allocation4], %s1035_s9 }
 0x94f   : > { %1477 = dma.done.wait (%p1259_p11), %s1036_s5, 128  }
 0x950   : > { %1479 = vsyncadd (%p1259_p11), %s1036_s5, 4294967168  ;;  %s1044_s14 = sand.u32 1, %s1486_s29   ;;  %p1999_p0 = scmp.ne.s32.totalorder %s1975_s8, 0 }
 0x951   : > { %s1045_s13 = scalar_lea.sflag [#allocation6], %s1044_s14 }
 0x952   : > { %p1261_p1 = pnand %p1264_p13, %p1999_p0 }
 0x954   : > { %p1262_p4 = pneg %p1261_p1 }
 0x956   : > { %1481 = dma.done.wait (%p1262_p4), %s1045_s13, 128  }
 0x957   : > { %1483 = vsyncadd (%p1262_p4), %s1045_s13, 4294967168  ;;  %s31_s23 = sadd.s32 1, %s1526_s23   ;;  %s2000_s6 = sld [smem:[#allocation15_spill]] }
 0x958   : > { %p28_p12 = scmp.ge.s32.totalorder %s31_s23, 10   ;;  %s2001_s19 = sld [smem:[#allocation10_spill]] }
 0x959   : > { %s2002_s20 = sld [smem:[#allocation11_spill]]  ;;  %s2005_s29 = smov %s1490_s30 }
 0x95a   : > { %s2003_s10 = sld [smem:[#allocation12_spill]]  ;;  %s2006_s30 = smov %s1494_s15 }
 0x95b   : > { %s2004_s22 = sld [smem:[#allocation14_spill]]  ;;  %s2007_s15 = smov %s1720_s21 }
 0x95c   : > { %s2008_s16 = smov %s1502_s17  ;;  %s2009_s17 = smov %s1506_s18 }
 0x95d   : > { %s2010_s18 = smov %s2000_s6  ;;  %30 = sbr.rel (!%p28_p12) target bundleno = 25 (0x19), region = 135 }
 0x960   : > { %s2011_s21 = smov %s2003_s10 }
 0x962   :  { %1050 = vsyncpa [#allocation4], 1 }
 0x963   :  { %1052 = vsyncpa [#allocation4 + $0x1], 1 }
 0x964   :  { %1053 = vsyncpa [#allocation6], 1 }
 0x965   :  { %1055 = vsyncpa [#allocation6 + $0x1], 1 }

// kernel: tpu_custom_call.1
= control target key start
LH: loop header
LB: loop body
LE: loop exit
PB: predicated region body
PF: predicated region fallthrough
CT: control target
= control target key end

     0   :  { %s1921_s0 = inlined_call_operand.vmem [shape: f32[2,8,32], index: 0, kind: input, shape index: {}]   ;;  %s1922_s1 = inlined_call_operand.vmem [shape: bf16[4,32,24], index: 1, kind: input, shape index: {}]   ;;  %s1923_s2 = inlined_call_operand.vmem [shape: f32[4,1,24], index: 2, kind: input, shape index: {}]   ;;  %s1924_s3 = inlined_call_operand.vmem [shape: bf16[4,8,32], index: 3, kind: input, shape index: {}]   ;;  %s1925_s4 = inlined_call_operand.vmem [shape: f32[1,32], index: 4, kind: input, shape index: {}]   ;;  %s1926_s5 = inlined_call_operand.vmem [shape: f32[1,32], index: 5, kind: input, shape index: {}]   ;;  %s1927_s6 = inlined_call_operand.vmem [shape: f32[1,32], index: 6, kind: input, shape index: {}]   ;;  %s1928_s7 = inlined_call_operand.vmem [shape: bf16[32,128], index: 7, kind: input, shape index: {}]   ;;  %s1929_s8 = inlined_call_operand.vmem [shape: f32[1,128], index: 8, kind: input, shape index: {}]   ;;  %s1930_s9 = inlined_call_operand.vmem [shape: bf16[128,32], index: 9, kind: input, shape index: {}]   ;;  %s1931_s10 = inlined_call_operand.vmem [shape: f32[1,32], index: 10, kind: input, shape index: {}]   ;;  %s1932_s11 = inlined_call_operand.vmem [shape: f32[1,32], index: 11, kind: input, shape index: {}]   ;;  %s1933_s12 = inlined_call_operand.vmem [shape: f32[1,32], index: 12, kind: input, shape index: {}]   ;;  %s1934_s13 = inlined_call_operand.hbm [shape: f32[2,8,32], index: 13, kind: output, shape index: {0}]   ;;  %s1935_s14 = inlined_call_operand.hbm [shape: f32[2,4,8,8], index: 14, kind: output, shape index: {1}]  }
   0x1   :  { %1948 = sst [smem:[#allocation16_spill]] %s1921_s0 }
   0x2   :  { %1949 = sst [smem:[#allocation17_spill]] %s1922_s1 }
   0x3   :  { %1950 = sst [smem:[#allocation18_spill]] %s1923_s2 }
   0x4   :  { %1951 = sst [smem:[#allocation19_spill]] %s1924_s3 }
   0x5   :  { %1952 = sst [smem:[#allocation20_spill]] %s1925_s4 }
   0x6   :  { %1953 = sst [smem:[#allocation21_spill]] %s1926_s5 }
   0x7   :  { %1954 = sst [smem:[#allocation22_spill]] %s1927_s6 }
   0x8   :  { %1955 = sst [smem:[#allocation23_spill]] %s1928_s7 }
   0x9   :  { %1956 = sst [smem:[#allocation24_spill]] %s1929_s8 }
   0xa   :  { %1957 = sst [smem:[#allocation25_spill]] %s1930_s9 }
   0xb   :  { %1958 = sst [smem:[#allocation26_spill]] %s1931_s10 }
   0xc   :  { %1959 = sst [smem:[#allocation27_spill]] %s1932_s11 }
   0xd   :  { %1960 = sst [smem:[#allocation28_spill]] %s1933_s12 }
   0xe   :  { %1961 = sst [smem:[#allocation29_spill]] %s1934_s13 }
   0xf   :  { %1962 = sst [smem:[#allocation30_spill]] %s1935_s14 }
  0x10   :  { %20 = vsyncpa [#allocation4], 0 }
  0x11   :  { %22 = vsyncpa [#allocation4 + $0x1], 0 }
  0x12   :  { %23 = vsyncpa [#allocation6], 0 }
  0x13   :  { %25 = vsyncpa [#allocation6 + $0x1], 0  ;;  %s1612_s29 = smov 0   ;;  %s1614_s30 = smov 0  }
  0x14   :  { %s1616_s15 = smov 0   ;;  %s1618_s16 = smov 0  }
  0x15   :  { %s1620_s17 = smov 0   ;;  %s1622_s18 = smov 0  }
  0x16   :  { %s1624_s19 = smov 0   ;;  %s1626_s20 = smov 0  }
  0x17   :  { %s1628_s21 = smov 0   ;;  %s1630_s22 = smov 0  }
  0x18   :  { %s1632_s23 = smov 0  }
  0x19 LB: > { %1963 = sst [smem:[#allocation9_spill]] %s1498_s16  ;;  %s1132_s24 = sadd.s32 4294967295, %s1526_s23   ;;  %s1526_s23 = sphi %s1632_s23, %s31_s23   ;;  %s1522_s22 = sphi %s1630_s22, %s2004_s22   ;;  %s1518_s21 = sphi %s1628_s21, %s2011_s21   ;;  %s1514_s20 = sphi %s1626_s20, %s2002_s20   ;;  %s1510_s19 = sphi %s1624_s19, %s2001_s19   ;;  %s1506_s18 = sphi %s1622_s18, %s2010_s18   ;;  %s1502_s17 = sphi %s1620_s17, %s2009_s17   ;;  %s1498_s16 = sphi %s1618_s16, %s2008_s16   ;;  %s1494_s15 = sphi %s1616_s15, %s2007_s15   ;;  %s1490_s30 = sphi %s1614_s30, %s2006_s30   ;;  %s1486_s29 = sphi %s1612_s29, %s2005_s29  }
  0x1a   : > { %1964 = sst [smem:[#allocation10_spill]] %s1518_s21  ;;  %s1133_s25 = sadd.s32 4294967294, %s1526_s23  }
  0x1b   : > { %1965 = sst [smem:[#allocation11_spill]] %s1522_s22  ;;  %s40_s26 = sadd.s32 1, %s1518_s21 }
  0x1c   : > { %s43_s27 = sadd.s32 1, %s1522_s22  ;;  %p41_p0 = scmp.ge.s32.totalorder %s40_s26, 4 }
  0x1d   : > { %s328_s28 = sadd.s32 1, %s1506_s18  ;;  %p338_p1 = scmp.ne.s32.totalorder %s1506_s18, %s1502_s17 }
  0x1e   : > { %p1674_p2 = scmp.eq.s32.totalorder %s1132_s24, 7  ;;  %s2013_s26 = smov (%p41_p0, %s40_s26), 0 }
  0x1f   : > { %1967 = sst [smem:[#allocation12_spill]] %s2013_s26  ;;  %s2015_s27 = smov (!%p41_p0, %s43_s27), %s1522_s22 }
  0x20   : > { %p1683_p3 = por %p1674_p2, %p338_p1  ;;  %p344_p4 = scmp.ne.s32.totalorder %s1502_s17, %s1498_s16 }
  0x21   : > { %p45_p5 = scmp.ge.s32.totalorder %s2015_s27, 2  ;;  %p1689_p6 = scmp.eq.s32.totalorder %s1133_s25, 7 }
  0x22   : > { %s1968_s13 = scalar_select %p1683_p3, 1, 0 }
  0x23   : > { %s352_s12 = ssub.s32 %s1518_s21, %s2013_s26  ;;  %s356_s11 = sadd.s32 1, %s1494_s15 }
  0x24   : > { %1969 = sst [smem:[#allocation13_spill]] %s1968_s13  ;;  %s2017_s27 = smov (%p45_p5, %s2015_s27), 0 }
  0x25   : > { %1971 = sst [smem:[#allocation14_spill]] %s2017_s27  ;;  %p1700_p7 = por %p1689_p6, %p344_p4 }
  0x26   : > { %p366_p8 = scmp.ne.s32.totalorder %s1494_s15, %s1490_s30  ;;  %s325_s16 = ssub.s32 %s1522_s22, %s2017_s27 }
  0x27   : > { %s1972_s10 = scalar_select %p1700_p7, 1, 0 }
  0x28   : > { %p372_p9 = scmp.ne.s32.totalorder %s1490_s30, %s1486_s29  ;;  %p326_p10 = scmp.eq.s32.totalorder %s325_s16, 0 }
  0x29   : > { %s353_s25 = sor.u32 %s352_s12, %s325_s16  ;;  %p1712_p12 = por %p366_p8, %p1674_p2 }
  0x2a   : > { %p354_p11 = scmp.eq.s32.totalorder %s353_s25, 0  ;;  %p1724_p13 = por %p372_p9, %p1689_p6 }
  0x2b   : > { %s1717_s26 = scalar_select %p326_p10, %s1506_s18, %s328_s28  }
  0x2c   : > { %s1720_s21 = scalar_select %p354_p11, %s1494_s15, %s356_s11  }
  0x2d   : > { %1974 = sst [smem:[#allocation15_spill]] %s1717_s26  ;;  %p1136_p0 = scmp.ge.s32.totalorder %s1526_s23, 1 }
  0x2e   : > { %s1975_s8 = scalar_select %p1724_p13, 1, 0 }
  0x2f   : > { %p434_p1 = scmp.lt.s32.totalorder %s1526_s23, 9 }
  0x31   : > { %p435_p4 = pnand %p1136_p0, %p434_p1 }
  0x32   : > { %s1945_s12 = sand.u32 (!%p435_p4), 1, %s1502_s17   ;;  %s1946_s14 = sand.u32 (!%p435_p4), 1, %s1490_s30  }
  0x33   : > { %438 = sbr.rel (%p435_p4) target bundleno = 2375 (0x947), region = 72  ;;  %s1734_s11 = sshll.u32 (!%p435_p4), %s1945_s12, 3 }
  0x34   : > { %s1738_s16 = sshll.u32 (!%p435_p4), %s1946_s14, 3  ;;  %p484_p2 = scmp.lt.s32.totalorder (!%p435_p4), %s1514_s20, 1 }
  0x35   : > { %s1976_s0 = sld [smem:[#allocation16_spill]] (!%p435_p4)  ;;  %s1947_s12 = scalar_lea.vmem (!%p435_p4), [#allocation5], %s1738_s16 }
  0x36   : > { %p1140_p5 = scmp.ne.s32.totalorder (!%p435_p4), %s1510_s19, 0 }
  0x38   : > { %s485_s28 = scalar_select %p484_p2, %s1514_s20, 1 }
  0x39   : > { %494 = sbr.rel (%p1140_p5) target bundleno = 64 (0x40), region = 76 }
  0x3a   : > { %s1139_s24 = sshll.u32 %s485_s28, 3 }
  0x3b   : > { %s487_s22 = scalar_lea.vmem %s1976_s0, %s1139_s24 }
  0x3c   : > { %v1745_v0 = vld [vmem:[%s487_s22] sm:$0xff] }
  0x3d   : > { %v490_v1 = vpack.c.bf16 %v1745_v0, %v1745_v0 }
  0x3e   : > { %vm495_vm0 = vcmask 261120   ;;  %v1528_v2 = vmov 0.0  }
  0x3f   : > { %496 = vst.msk [vmem:[#allocation2] sm:$0xff] %vm495_vm0, %v1528_v2 }
  0x40 PF: > { %s1177_s28 = sshll.u32 %s1510_s19, 4  ;;  %v1529_v3 = vmov 0.0   ;;  %s1977_s1 = sld [smem:[#allocation17_spill]]  ;;  %vm1530_vm1 = vmmov 0   ;;  %vm524_vm2 = vcmask 261120   ;;  %vm572_vm3 = vcmask 64512  }
  0x41   : > { %1199 = vmatprep.subr.bf16.mxu0 %v1529_v3  ;;  %1203 = vmatprep.mubr.msk.bf16.mxu0 %vm1530_vm1, %v1529_v3  ;;  %s1978_s2 = sld [smem:[#allocation18_spill]]  ;;  %s1531_s22 = smov 120   ;;  %vm637_vm4 = vcmask 1043456  }
  0x42   : > { %1207 = vmatprep.subr.bf16.mxu1 %v1529_v3  ;;  %1209 = vmatprep.mubr.msk.bf16.mxu1 %vm1530_vm1, %v1529_v3  ;;  %s1979_s3 = sld [smem:[#allocation19_spill]]  ;;  %p1151_p6 = scmp.ne.s32.totalorder %s1510_s19, 3 }
  0x43   : > { %s1980_s4 = sld [smem:[#allocation20_spill]] (!%p1151_p6)  ;;  %s1989_s14 = scalar_lea.vmem (!%p1151_p6), [#allocation3], %s1734_s11 }
  0x44   : > { %s1981_s7 = sld [smem:[#allocation23_spill]] (!%p1151_p6) }
  0x45   : > { %s1982_s9 = sld [smem:[#allocation25_spill]] (!%p1151_p6) }
  0x46   : > { %s499_s24 = scalar_lea.vmem %s1977_s1, %s1177_s28  ;;  %v681_v38 = vld [vmem:[#allocation2] sm:$0xff]  ;;  %s1983_s5 = sld [smem:[#allocation21_spill]] (!%p1151_p6) }
  0x47   : > { %v1360_v4 = vld [vmem:[%s499_s24 + $0x8] sm:$0xff]   ;;  %v1361_v5 = vld [vmem:[%s499_s24] sm:$0xff]   ;;  %s504_s28 = scalar_lea.vmem %s1978_s2, %s1510_s19  ;;  %s1149_s24 = sshll.u32 %s1510_s19, 2 }
  0x48   : > { %1200 = vmatpush3.bf16.msra.mxu0 %v1360_v4  ;;  %v1143_v6 = vld [vmem:[%s504_s28] ss:$0 sm:$0xff]  ;;  %s684_s28 = scalar_lea.vmem %s1979_s3, %s1149_s24  ;;  %s1984_s6 = sld [smem:[#allocation22_spill]] (!%p1151_p6) }
  0x49   : > { %1201 = vmatprep.subr.bf16.mxu0 %v1529_v3  ;;  %v685_v25 = vld [vmem:[%s684_s28] sm:$0xf]  ;;  %s1986_s25 = sld [smem:[#allocation26_spill]] (!%p1151_p6) }
  0x4a   : > { %v690_v26 = vsel %vm637_vm4, %v685_v25, 0  ;;  %s1987_s26 = sld [smem:[#allocation27_spill]] (!%p1151_p6) }
  0x4b   : > { %s1988_s24 = sld [smem:[#allocation28_spill]] (!%p1151_p6) }
  0x4c   : > { %1202 = vmatpush3.bf16.msra.mxu0 %v1361_v5 }
  0x4d   : > { %1213 = vmatprep.subr.bf16.mxu0 %v1529_v3 }
  0x4f   : > { %1204 = vmatmul.mubr.msk.bf16.vlgmr.msra.gmra.mxu0 %vm524_vm2, %v490_v1 }
  0x50   : > { %1215 = vmatprep.mubr.msk.bf16.mxu0 %vm1530_vm1, %v1529_v3 }
 0x10f   : > { %v562_v7 = vpop.f32.mrf.mxu0 }
 0x110   : > { %v563_v8 = vadd.f32 %v1143_v6, %v562_v7 }
 0x111   : > { %v1205_v9 = vpop.f32.mrf.mxu0 }
 0x112   : > { %v568_v10 = vpack.c.bf16 %v563_v8, %v563_v8 }
 0x113   : > { %v565_v11 = vpop.f32.mrf.mxu0 }
 0x114   : > { %570 = vrot.lane.b32.xlu0 %v568_v10, %s1531_s22  ;;  %s1532_s22 = smov 112  }
 0x115   : > { %v1206_v12 = vpop.f32.mrf.mxu0 }
 0x186   : > { %v571_v13 = vpop.permute.xlu0 %570 }
 0x187   : > { %v577_v14 = vsel %vm572_vm3, %v571_v13, 0 }
 0x188   : > { %1208 = vmatpush3.bf16.xpose.msra.mxu1 %v577_v14 }
 0x189   : > { %1219 = vmatprep.subr.bf16.mxu1 %v1529_v3 }
 0x18f   : > { %1210 = vmatmul.mubr.msk.bf16.vlgmr.msra.gmra.mxu1 %vm572_vm3, %v568_v10 }
 0x190   : > { %1221 = vmatprep.mubr.msk.bf16.mxu1 %vm1530_vm1, %v1529_v3  ;;  %1220 = vmatpush3.bf16.msra.mxu1 %v690_v26 }
 0x24f   : > { %v613_v15 = vpop.f32.mrf.mxu1 }
 0x250   : > { %v619_v16 = vsel %vm572_vm3, %v613_v15, -inf }
 0x251   : > { %620 = vmax.xlane.f32.xlu0 %v619_v16  ;;  %v1211_v17 = vpop.f32.mrf.mxu1 }
 0x253   : > { %v616_v18 = vpop.f32.mrf.mxu1 }
 0x255   : > { %v1212_v19 = vpop.f32.mrf.mxu1 }
 0x2da   : > { %v621_v20 = vpop.xlane.xlu0 %620 }
 0x2db   : > { %v622_v21 = vsub.f32 %v613_v15, %v621_v20 }
 0x2dd   : > { %v623_v22 = vmul.f32 1.442695, %v622_v21 }
 0x2df   : > { %1362 = vpow2.f32 %v623_v22 }
 0x2ec   : > { %v1363_v23 = vpop.eup %1362 }
 0x2ed   : > { %v625_v24 = vsel %vm572_vm3, %v1363_v23, 0.0 }
 0x2ee   : > { %626 = vadd.xlane.f32.xlu1 %v625_v24 }
 0x2ff   : > { %632 = vrot.lane.b32.xlu1 %v568_v10, %s1532_s22  ;;  %s1985_s22 = sld [smem:[#allocation24_spill]] (!%p1151_p6) }
 0x377   : > { %v627_v27 = vpop.xlane.xlu1 %626 }
 0x378   : > { %1364 = vrcp.f32 %v627_v27 }
 0x37b   : > { %v633_v28 = vpop.permute.xlu1 %632 }
 0x37c   : > { %v639_v29 = vsel %vm637_vm4, %v633_v28, 0 }
 0x37d   : > { %1214 = vmatpush3.bf16.msra.mxu0 %v639_v29 }
 0x385   : > { %v1365_v30 = vpop.eup %1364 }
 0x386   : > { %v629_v31 = vmul.f32 %v1365_v30, %v1363_v23 }
 0x388   : > { %630 = vst.msk [vmem:[%s1947_s12] sm:$0xff] %vm572_vm3, %v629_v31  ;;  %v631_v32 = vpack.c.bf16 %v629_v31, %v629_v31 }
 0x38a   : > { %1216 = vmatmul.mubr.msk.bf16.vlgmr.msra.gmra.mxu0 %vm572_vm3, %v631_v32 }
 0x44a   : > { %v675_v33 = vpop.f32.mrf.mxu0 }
 0x44b   : > { %v682_v34 = vpack.c.bf16 %v675_v33, %v675_v33 }
 0x44c   : > { %v1217_v35 = vpop.f32.mrf.mxu0 }
 0x44d   : > { %1222 = vmatmul.mubr.msk.bf16.vlgmr.msra.gmra.mxu1 %vm572_vm3, %v682_v34 }
 0x44e   : > { %v678_v36 = vpop.f32.mrf.mxu0 }
 0x450   : > { %v1218_v37 = vpop.f32.mrf.mxu0 }
 0x50d   : > { %v726_v39 = vpop.f32.mrf.mxu1 }
 0x50e   : > { %v732_v40 = vadd.f32 %v726_v39, %v681_v38 }
 0x50f   : > { %v1223_v41 = vpop.f32.mrf.mxu1  ;;  %737 = sbr.rel (%p1151_p6) target bundleno = 2323 (0x913), region = 80 }
 0x510   : > { %733 = vst.msk [vmem:[#allocation2] sm:$0xff] %vm524_vm2, %v732_v40 }
 0x511   : > { %v729_v42 = vpop.f32.mrf.mxu1 }
 0x513   : > { %v1224_v43 = vpop.f32.mrf.mxu1 }
 0x514   : > { %v1152_v45 = vld [vmem:[%s1980_s4] ss:$0 sm:$0xff]  ;;  %v1366_v54 = vld [vmem:[%s1981_s7 + $0x8] sm:$0xff]   ;;  %v1533_v55 = vmov 0.0   ;;  %vm1534_vm5 = vmmov 0   ;;  %v1368_v57 = vld [vmem:[%s1982_s9 + $0x38] sm:$0xff]  }
 0x515   : > { %1225 = vmatprep.subr.bf16.mxu0 %v1533_v55  ;;  %1229 = vmatprep.mubr.msk.bf16.mxu0 %vm1534_vm5, %v1533_v55  ;;  %v1367_v56 = vld [vmem:[%s1981_s7] sm:$0xff]   ;;  %v1369_v58 = vld [vmem:[%s1982_s9 + $0x30] sm:$0xff]   ;;  %v1370_v59 = vld [vmem:[%s1982_s9 + $0x28] sm:$0xff]  }
 0x516   : > { %1226 = vmatpush3.bf16.msra.mxu0 %v1366_v54  ;;  %1233 = vmatprep.subr.bf16.mxu1 %v1533_v55  ;;  %v1371_v60 = vld [vmem:[%s1982_s9 + $0x20] sm:$0xff]   ;;  %v1372_v61 = vld [vmem:[%s1982_s9 + $0x18] sm:$0xff]   ;;  %v1373_v62 = vld [vmem:[%s1982_s9 + $0x10] sm:$0xff]  }
 0x517   : > { %v738_v44 = vld [vmem:[#allocation2] sm:$0xff]  ;;  %1227 = vmatprep.subr.bf16.mxu0 %v1533_v55  ;;  %1249 = vmatprep.mubr.msk.bf16.mxu1 %vm1534_vm5, %v1533_v55  ;;  %v1374_v9 = vld [vmem:[%s1982_s9 + $0x8] sm:$0xff]  }
 0x518   : > { %v746_v46 = vadd.f32 %v1152_v45, %v738_v44  ;;  %1234 = vmatpush3.bf16.msra.mxu1 %v1368_v57  ;;  %v1153_v3 = vld [vmem:[%s1983_s5] ss:$0 sm:$0xff] }
 0x519   : > { %1235 = vmatprep.subr.bf16.mxu1 %v1533_v55  ;;  %v1154_v5 = vld [vmem:[%s1984_s6] ss:$0 sm:$0xff] }
 0x51a   : > { %v747_v47 = vadd.f32 %v746_v46, %v1745_v0  ;;  %1228 = vmatpush3.bf16.msra.mxu0 %v1367_v56  ;;  %v1375_v10 = vld [vmem:[%s1982_s9] sm:$0xff]  }
 0x51b   : > { %v1155_v11 = vld [vmem:[%s1985_s22] ss:$0 sm:$0xff] }
 0x51c   : > { %v750_v48 = vsel %vm524_vm2, %v747_v47, 0.0  ;;  %1236 = vmatpush3.bf16.msra.mxu1 %v1369_v58  ;;  %v1159_v19 = vld [vmem:[%s1986_s25] ss:$0 sm:$0xff] }
 0x51d   : > { %751 = vadd.xlane.f32.xlu0 %v750_v48  ;;  %1237 = vmatprep.subr.bf16.mxu1 %v1533_v55  ;;  %v1168_v36 = vld [vmem:[%s1987_s26] ss:$0 sm:$0xff] }
 0x51e   : > { %v1169_v38 = vld [vmem:[%s1988_s24] ss:$0 sm:$0xff] }
 0x520   : > { %1238 = vmatpush3.bf16.msra.mxu1 %v1370_v59 }
 0x521   : > { %1239 = vmatprep.subr.bf16.mxu1 %v1533_v55 }
 0x524   : > { %1240 = vmatpush3.bf16.msra.mxu1 %v1371_v60 }
 0x525   : > { %1241 = vmatprep.subr.bf16.mxu1 %v1533_v55 }
 0x528   : > { %1242 = vmatpush3.bf16.msra.mxu1 %v1372_v61 }
 0x529   : > { %1243 = vmatprep.subr.bf16.mxu1 %v1533_v55 }
 0x52c   : > { %1244 = vmatpush3.bf16.msra.mxu1 %v1373_v62 }
 0x52d   : > { %1245 = vmatprep.subr.bf16.mxu1 %v1533_v55 }
 0x530   : > { %1246 = vmatpush3.bf16.msra.mxu1 %v1374_v9 }
 0x531   : > { %1247 = vmatprep.subr.bf16.mxu1 %v1533_v55 }
 0x534   : > { %1248 = vmatpush3.bf16.msra.mxu1 %v1375_v10 }
 0x5a6   : > { %v752_v49 = vpop.xlane.xlu0 %751 }
 0x5a7   : > { %v754_v50 = vmul.f32 0.03125, %v752_v49 }
 0x5a9   : > { %v755_v51 = vsub.f32 %v747_v47, %v754_v50 }
 0x5ab   : > { %v756_v52 = vmul.f32 %v755_v51, %v755_v51 }
 0x5ad   : > { %v757_v53 = vsel %vm524_vm2, %v756_v52, 0.0 }
 0x5ae   : > { %758 = vadd.xlane.f32.xlu0 %v757_v53 }
 0x637   : > { %v759_v63 = vpop.xlane.xlu0 %758 }
 0x638   : > { %v760_v0 = vmul.f32 0.03125, %v759_v63 }
 0x63a   : > { %v761_v1 = vadd.f32 1e-05, %v760_v0 }
 0x63c   : > { %1376 = vrsqrt.f32 %v761_v1 }
 0x649   : > { %v1377_v2 = vpop.eup %1376 }
 0x64a   : > { %v763_v4 = vmul.f32 %v1377_v2, %v755_v51 }
 0x64c   : > { %v770_v6 = vmul.f32 %v1153_v3, %v763_v4 }
 0x64e   : > { %v777_v7 = vadd.f32 %v1154_v5, %v770_v6 }
 0x650   : > { %v778_v8 = vpack.c.bf16 %v777_v7, %v777_v7 }
 0x652   : > { %1230 = vmatmul.mubr.msk.bf16.vlgmr.msra.gmra.mxu0 %vm524_vm2, %v778_v8 }
 0x712   : > { %v839_v12 = vpop.f32.mrf.mxu0 }
 0x713   : > { %v840_v13 = vadd.f32 %v1155_v11, %v839_v12 }
 0x714   : > { %v1231_v14 = vpop.f32.mrf.mxu0 }
 0x715   : > { %v845_v15 = vmax.f32 %v840_v13, 0.0 }
 0x716   : > { %v842_v16 = vpop.f32.mrf.mxu0 }
 0x717   : > { %v846_v17 = vpack.c.bf16 %v845_v15, %v845_v15 }
 0x718   : > { %v1232_v18 = vpop.f32.mrf.mxu0 }
 0x719   : > { %1250 = vmatmul.mubr.bf16.vlgmr.msra.gmra.mxu1 %v846_v17 }
 0x7d9   : > { %v952_v20 = vpop.f32.mrf.mxu1 }
 0x7da   : > { %v953_v21 = vadd.f32 %v1159_v19, %v952_v20 }
 0x7db   : > { %v1251_v22 = vpop.f32.mrf.mxu1 }
 0x7dc   : > { %v958_v23 = vadd.f32 %v953_v21, %v777_v7 }
 0x7dd   : > { %v955_v24 = vpop.f32.mrf.mxu1 }
 0x7de   : > { %v961_v25 = vsel %vm524_vm2, %v958_v23, 0.0 }
 0x7df   : > { %962 = vadd.xlane.f32.xlu1 %v961_v25  ;;  %v1252_v26 = vpop.f32.mrf.mxu1 }
 0x868   : > { %v963_v27 = vpop.xlane.xlu1 %962 }
 0x869   : > { %v964_v28 = vmul.f32 0.03125, %v963_v27 }
 0x86b   : > { %v965_v29 = vsub.f32 %v958_v23, %v964_v28 }
 0x86d   : > { %v966_v30 = vmul.f32 %v965_v29, %v965_v29 }
 0x86f   : > { %v967_v31 = vsel %vm524_vm2, %v966_v30, 0.0 }
 0x870   : > { %968 = vadd.xlane.f32.xlu1 %v967_v31 }
 0x8f9   : > { %v969_v32 = vpop.xlane.xlu1 %968 }
 0x8fa   : > { %v970_v33 = vmul.f32 0.03125, %v969_v32 }
 0x8fc   : > { %v971_v34 = vadd.f32 1e-05, %v970_v33 }
 0x8fe   : > { %1378 = vrsqrt.f32 %v971_v34 }
 0x90b   : > { %v1379_v35 = vpop.eup %1378 }
 0x90c   : > { %v973_v37 = vmul.f32 %v1379_v35, %v965_v29 }
 0x90e   : > { %v980_v39 = vmul.f32 %v1168_v36, %v973_v37 }
 0x910   : > { %v987_v40 = vadd.f32 %v1169_v38, %v980_v39 }
 0x912   : > { %988 = vst.msk [vmem:[%s1989_s14] sm:$0xff] %vm524_vm2, %v987_v40 }
 0x913 PF: > { %s1172_s0 = sshll.u32 %s1514_s20, 7  ;;  %s1991_s27 = sld [smem:[#allocation29_spill]] }
 0x914   : > { %s1992_s26 = scalar_lea.vmem [#allocation3], %s1734_s11  ;;  %s1993_s12 = sand.u32 1, %s1502_s17  }
 0x915   : > { %s1008_s3 = sshll.u32 %s1992_s26, 4  ;;  %s990_s22 = scalar_lea.sflag [#allocation4], %s1993_s12  ;;  %s1009_s3 = int_to_ptr.vmem [resolvable:$true] %s1008_s3 }
 0x916   : > { %s1380_s24 = scalar_lea.vmem %s1009_s3, 128  ;;  %s1535_s14 = smov [#allocation3]  }
 0x917   : > { %p1381_p8 = scmp.ne.s32.totalorder %s1009_s3, %s1380_s24  ;;  %s1384_s4 = sshll.u32 %s1535_s14, 4  ;;  %s1385_s4 = int_to_ptr.vmem [resolvable:$false] %s1384_s4 }
 0x918   : > { %s1386_s5 = scalar_lea.vmem %s1385_s4, 256  ;;  %p1387_p11 = scmp.lt.s32.totalorder %s1009_s3, %s1385_s4 }
 0x919   : > { %s1006_s28 = scalar_lea.hbm %s1991_s27, %s1172_s0  ;;  %p1382_p9 = pnand %p1381_p8, %p1683_p3 }
 0x91a   : > { %p1388_p0 = scmp.lt.s32.totalorder %s1386_s5, %s1380_s24 }
 0x91b   : > { %p1383_p10 = pneg %p1382_p9 }
 0x91c   : > { %p1389_p1 = por %p1388_p0, %p1387_p11 }
 0x91e   : > { %p1390_p4 = pnand %p1389_p1, %p1383_p10 }
 0x920   : > { %1393 = shalt.err (!%p1390_p4)
}
 0x921   : > { %s1394_s0 = scalar_lea.hbm %s1006_s28, 128  ;;  %s1398_s11 = scalar_lea.hbm %s1991_s27, 256 }
 0x922   : > { %p1395_p2 = scmp.ne.s32.totalorder %s1006_s28, %s1394_s0  ;;  %p1399_p8 = scmp.lt.s32.totalorder %s1006_s28, %s1991_s27 }
 0x923   : > { %p1400_p9 = scmp.lt.s32.totalorder %s1398_s11, %s1394_s0 }
 0x924   : > { %p1396_p5 = pnand %p1395_p2, %p1683_p3 }
 0x925   : > { %p1401_p13 = por %p1400_p9, %p1399_p8 }
 0x926   : > { %p1397_p6 = pneg %p1396_p5 }
 0x928   : > { %p1402_p7 = pnand %p1401_p13, %p1397_p6 }
 0x92a   : > { %1405 = shalt.err (!%p1402_p7)
}
 0x92b   : > { %1253 = dma.vmem_to_hbm [thread:$0]  (%p1683_p3), %s1009_s3, 128, %s1006_s28, %s990_s22  }
 0x92c   : > { %s1173_s4 = sshll.u32 %s1514_s20, 2  ;;  %s1994_s5 = scalar_lea.vmem [#allocation5], %s1738_s16 }
 0x92d   : > { %s1023_s24 = sshll.u32 %s1994_s5, 4  ;;  %s1019_s14 = sadd.s32 %s1510_s19, %s1173_s4  ;;  %s1024_s24 = int_to_ptr.vmem [resolvable:$true] %s1023_s24 }
 0x92e   : > { %s1174_s1 = sshll.u32 %s1019_s14, 7  ;;  %s1995_s0 = sld [smem:[#allocation30_spill]] }
 0x92f   : > { %s1996_s12 = sand.u32 1, %s1490_s30   ;;  %s1406_s7 = scalar_lea.vmem %s1024_s24, 128 }
 0x930   : > { %s995_s6 = scalar_lea.sflag [#allocation6], %s1996_s12  ;;  %p1407_p7 = scmp.ne.s32.totalorder %s1024_s24, %s1406_s7 }
 0x931   : > { %s1536_s25 = smov [#allocation5]  }
 0x932   : > { %p1408_p13 = pnand %p1407_p7, %p1712_p12  ;;  %s1410_s9 = sshll.u32 %s1536_s25, 4  ;;  %s1411_s9 = int_to_ptr.vmem [resolvable:$false] %s1410_s9 }
 0x933   : > { %s1412_s3 = scalar_lea.vmem %s1411_s9, 256  ;;  %p1413_p3 = scmp.lt.s32.totalorder %s1024_s24, %s1411_s9 }
 0x934   : > { %s1021_s11 = scalar_lea.hbm %s1995_s0, %s1174_s1  ;;  %p1409_p10 = pneg %p1408_p13 }
 0x935   : > { %p1414_p11 = scmp.lt.s32.totalorder %s1412_s3, %s1406_s7 }
 0x937   : > { %p1415_p0 = por %p1414_p11, %p1413_p3 }
 0x939   : > { %p1416_p1 = pnand %p1415_p0, %p1409_p10 }
 0x93b   : > { %1419 = shalt.err (!%p1416_p1)
}
 0x93c   : > { %s1420_s19 = scalar_lea.hbm %s1021_s11, 128  ;;  %s1424_s28 = scalar_lea.hbm %s1995_s0, 1024 }
 0x93d   : > { %p1421_p4 = scmp.ne.s32.totalorder %s1021_s11, %s1420_s19  ;;  %p1425_p6 = scmp.lt.s32.totalorder %s1021_s11, %s1995_s0 }
 0x93e   : > { %p1426_p8 = scmp.lt.s32.totalorder %s1424_s28, %s1420_s19 }
 0x93f   : > { %p1422_p2 = pnand %p1421_p4, %p1712_p12 }
 0x940   : > { %p1427_p9 = por %p1426_p8, %p1425_p6 }
 0x941   : > { %p1423_p5 = pneg %p1422_p2 }
 0x943   : > { %p1428_p7 = pnand %p1427_p9, %p1423_p5 }
 0x945   : > { %1431 = shalt.err (!%p1428_p7)
}
 0x946   : > { %1254 = dma.vmem_to_hbm [thread:$0]  (%p1712_p12), %s1024_s24, 128, %s1021_s11, %s995_s6  }
 0x947 PF: > { %s1997_s7 = sld [smem:[#allocation9_spill]]  ;;  %p1264_p13 = scmp.ge.s32.totalorder %s1526_s23, 2 }
 0x948   : > { %p1998_p10 = scmp.ne.s32.totalorder %s1972_s10, 0 }
 0x94a   : > { %p1258_p3 = pnand %p1264_p13, %p1998_p10 }
 0x94c   : > { %p1259_p11 = pneg %p1258_p3 }
 0x94d   : > { %s1035_s9 = sand.u32 1, %s1997_s7  }
 0x94e   : > { %s1036_s5 = scalar_lea.sflag [#allocation4], %s1035_s9 }
 0x94f   : > { %1477 = dma.done.wait (%p1259_p11), %s1036_s5, 128  }
 0x950   : > { %1479 = vsyncadd (%p1259_p11), %s1036_s5, 4294967168  ;;  %s1044_s14 = sand.u32 1, %s1486_s29   ;;  %p1999_p0 = scmp.ne.s32.totalorder %s1975_s8, 0 }
 0x951   : > { %s1045_s13 = scalar_lea.sflag [#allocation6], %s1044_s14 }
 0x952   : > { %p1261_p1 = pnand %p1264_p13, %p1999_p0 }
 0x954   : > { %p1262_p4 = pneg %p1261_p1 }
 0x956   : > { %1481 = dma.done.wait (%p1262_p4), %s1045_s13, 128  }
 0x957   : > { %1483 = vsyncadd (%p1262_p4), %s1045_s13, 4294967168  ;;  %s31_s23 = sadd.s32 1, %s1526_s23   ;;  %s2000_s6 = sld [smem:[#allocation15_spill]] }
 0x958   : > { %p28_p12 = scmp.ge.s32.totalorder %s31_s23, 10   ;;  %s2001_s19 = sld [smem:[#allocation10_spill]] }
 0x959   : > { %s2002_s20 = sld [smem:[#allocation11_spill]]  ;;  %s2005_s29 = smov %s1490_s30 }
 0x95a   : > { %s2003_s10 = sld [smem:[#allocation12_spill]]  ;;  %s2006_s30 = smov %s1494_s15 }
 0x95b   : > { %s2004_s22 = sld [smem:[#allocation14_spill]]  ;;  %s2007_s15 = smov %s1720_s21 }
 0x95c   : > { %s2008_s16 = smov %s1502_s17  ;;  %s2009_s17 = smov %s1506_s18 }
 0x95d   : > { %s2010_s18 = smov %s2000_s6  ;;  %30 = sbr.rel (!%p28_p12) target bundleno = 25 (0x19), region = 135 }
 0x960   : > { %s2011_s21 = smov %s2003_s10 }
 0x962   :  { %1050 = vsyncpa [#allocation4], 1 }
 0x963   :  { %1052 = vsyncpa [#allocation4 + $0x1], 1 }
 0x964   :  { %1053 = vsyncpa [#allocation6], 1 }
 0x965   :  { %1055 = vsyncpa [#allocation6 + $0x1], 1 }

</bundles_post_ra>
